<compile_context>
chip_gen: v7x
topology: tpu7x:2x2x1
jax: 0.10.0
libtpu: 0.0.40
codegen_flags: <defaults>
</compile_context>

<pallas_src>
import functools
import numpy as np

import jax
import jax.numpy as jnp
from jax import lax
from jax.experimental import pallas as pl
from jax.experimental.pallas import tpu as pltpu


_VMEM_LIMIT = 48 * 1024 * 1024     # deliberate per-kernel VMEM budget (<= v7x 64 MiB)


def _round_up(v, m):
    return ((v + m - 1) // m) * m


# ----------------------------------------------------------------------------
# Kernel 1: tiled linear  Y = X @ W + b  (time-parallel LSTM input projections)
# ----------------------------------------------------------------------------
def _linear_kernel(x_ref, w_ref, b_ref, o_ref):
    o_ref[...] = (
        jnp.dot(x_ref[...], w_ref[...], preferred_element_type=jnp.float32)
        + b_ref[...]
    )


def pallas_linear(x, w, b, tm=512):
    """x: (M, K), w: (K, N), b: (1, N) -> (M, N), tiled over M."""
    M, K = x.shape
    N = w.shape[1]
    tm = min(tm, _round_up(M, 8))
    Mp = _round_up(M, tm)
    if Mp != M:
        x = jnp.pad(x, ((0, Mp - M), (0, 0)))
    out = pl.pallas_call(
        _linear_kernel,
        out_shape=jax.ShapeDtypeStruct((Mp, N), jnp.float32),
        grid=(Mp // tm,),
        in_specs=[
            pl.BlockSpec((tm, K), lambda i: (i, 0)),
            pl.BlockSpec((K, N), lambda i: (0, 0)),
            pl.BlockSpec((1, N), lambda i: (0, 0)),
        ],
        out_specs=pl.BlockSpec((tm, N), lambda i: (i, 0)),
        compiler_params=pltpu.CompilerParams(
            dimension_semantics=("parallel",),
            vmem_limit_bytes=_VMEM_LIMIT),
    )(x, w, b)
    return out[:M] if Mp != M else out


# ----------------------------------------------------------------------------
# Kernel 2: bidirectional LSTM layer recurrence (weights resident in VMEM,
# h/c in VMEM scratch, both directions fused into one matmul per step).
# Gate column layout of the fused matmul: [i_f,i_b, f_f,f_b, g_f,g_b, o_f,o_b]
# (each block width H); h/c scratch layout: [fw | bw] (width 2H).
# ----------------------------------------------------------------------------
def _bilstm_layer_kernel(xp_ref, m_ref, whh_ref, bhh_ref,
                         out_fw_ref, out_bw_ref, h_sc, c_sc, *, H):
    t = pl.program_id(0)

    @pl.when(t == 0)
    def _():
        h_sc[...] = jnp.zeros_like(h_sc)
        c_sc[...] = jnp.zeros_like(c_sc)

    gates = (xp_ref[0]
             + jnp.dot(h_sc[...], whh_ref[...], preferred_element_type=jnp.float32)
             + bhh_ref[...])                               # (B, 8H)
    i = jax.nn.sigmoid(gates[:, 0:2 * H])
    f = jax.nn.sigmoid(gates[:, 2 * H:4 * H])
    g = jnp.tanh(gates[:, 4 * H:6 * H])
    o = jax.nn.sigmoid(gates[:, 6 * H:8 * H])
    c_new = f * c_sc[...] + i * g
    h_new = o * jnp.tanh(c_new)

    m2 = m_ref[0]                                          # (B, 2): fw mask, bw mask
    B = m2.shape[0]
    m = jnp.concatenate(
        [jnp.broadcast_to(m2[:, 0:1], (B, H)),
         jnp.broadcast_to(m2[:, 1:2], (B, H))], axis=-1)   # (B, 2H)

    h_upd = m * h_new + (1.0 - m) * h_sc[...]
    c_upd = m * c_new + (1.0 - m) * c_sc[...]
    h_sc[...] = h_upd
    c_sc[...] = c_upd

    out = h_upd * m                                        # padded steps emit zeros
    out_fw_ref[0] = out[:, 0:H]
    out_bw_ref[0] = out[:, H:2 * H]


def _bilstm_layer_pallas(x, mask_f, layer):
    B, T, D = x.shape
    H = layer["fw"]["W_hh"].shape[0]

    # Single fused, time-parallel input projection for BOTH directions:
    # x @ [W_ih_fw | W_ih_bw]  -> one wide matmul, one read of x.
    W_ih_cat = jnp.concatenate([layer["fw"]["W_ih"], layer["bw"]["W_ih"]], axis=1)
    b_ih_cat = jnp.concatenate([layer["fw"]["b_ih"], layer["bw"]["b_ih"]], axis=1)
    xp = pallas_linear(x.reshape(B * T, D), W_ih_cat, b_ih_cat).reshape(B, T, 8 * H)
    xp_fw = xp[..., :4 * H]                                 # (B, T, 4H)
    xp_bw = xp[..., 4 * H:]                                 # (B, T, 4H)

    xp_fw_t = jnp.transpose(xp_fw, (1, 0, 2))               # (T, B, 4H)
    xp_bw_t = jnp.transpose(xp_bw[:, ::-1], (1, 0, 2))      # time-reversed (T, B, 4H)
    # Interleave gates per direction: column = (gate*2 + dir)*H + h.
    xp_cat = jnp.stack([xp_fw_t.reshape(T, B, 4, H),
                        xp_bw_t.reshape(T, B, 4, H)], axis=3).reshape(T, B, 8 * H)

    m_cat = jnp.stack([mask_f.T, mask_f[:, ::-1].T], axis=-1)   # (T, B, 2)

    # Block-diagonal recurrent weight matching the interleaved gate layout.
    Wf = layer["fw"]["W_hh"].reshape(H, 4, H)
    Wb = layer["bw"]["W_hh"].reshape(H, 4, H)
    W_cat = jnp.zeros((2 * H, 4, 2, H), jnp.float32)
    W_cat = W_cat.at[:H, :, 0, :].set(Wf)
    W_cat = W_cat.at[H:, :, 1, :].set(Wb)
    W_cat = W_cat.reshape(2 * H, 8 * H)
    b_cat = jnp.stack([layer["fw"]["b_hh"].reshape(4, H),
                       layer["bw"]["b_hh"].reshape(4, H)], axis=1).reshape(1, 8 * H)

    def bw_index(t):
        return (T - 1 - t, 0, 0)

    kernel = functools.partial(_bilstm_layer_kernel, H=H)
    out_fw, out_bw = pl.pallas_call(
        kernel,
        out_shape=(jax.ShapeDtypeStruct((T, B, H), jnp.float32),
                   jax.ShapeDtypeStruct((T, B, H), jnp.float32)),
        grid=(T,),
        in_specs=[
            pl.BlockSpec((1, B, 8 * H), lambda t: (t, 0, 0)),
            pl.BlockSpec((1, B, 2), lambda t: (t, 0, 0)),
            pl.BlockSpec((2 * H, 8 * H), lambda t: (0, 0)),
            pl.BlockSpec((1, 8 * H), lambda t: (0, 0)),
        ],
        out_specs=(
            pl.BlockSpec((1, B, H), lambda t: (t, 0, 0)),
            pl.BlockSpec((1, B, H), bw_index),   # backward outputs land un-reversed
        ),
        scratch_shapes=[pltpu.VMEM((B, 2 * H), jnp.float32),
                        pltpu.VMEM((B, 2 * H), jnp.float32)],
        compiler_params=pltpu.CompilerParams(
            dimension_semantics=("arbitrary",),      # sequential recurrence
            vmem_limit_bytes=_VMEM_LIMIT),
    )(xp_cat, m_cat, W_cat, b_cat)

    fw = jnp.transpose(out_fw, (1, 0, 2))               # (B, T, H)
    bw = jnp.transpose(out_bw, (1, 0, 2))
    return jnp.concatenate([fw, bw], axis=-1)            # (B, T, 2H)


def bilstm_pallas(x, mask_f, layers):
    h = x
    for layer in layers:
        h = _bilstm_layer_pallas(h, mask_f, layer)
    return h


# ----------------------------------------------------------------------------
# Kernel 3: fused parser head.  grid = (B, O): at o==0 the four MLPs (one
# fused matmul) + arc biaffine are computed and rel_d / rel_h^T are parked in
# VMEM scratch; every (b, o) step computes one label's (T, T) rel score block.
# ----------------------------------------------------------------------------
def _head_kernel(x_ref, mask_ref, w_all_ref, b_all_ref,
                 ua_main_ref, ua_bias_ref,
                 ur_mm_ref, ur_db_ref, ur_hb_ref, ur_bb_ref,
                 s_arc_ref, s_rel_ref,
                 rel_d_sc, rel_hT_sc, *, Ap, Rp):
    o_idx = pl.program_id(1)

    @pl.when(o_idx == 0)
    def _():
        x = x_ref[0]                                         # (T, H2)
        # Fused 4-way MLP: one wide MXU pass, lane-aligned 128-multiple slices.
        y = (jnp.dot(x, w_all_ref[...], preferred_element_type=jnp.float32)
             + b_all_ref[...])
        y = jnp.where(y > 0, y, 0.1 * y)                     # LeakyReLU(0.1)
        arc_h = y[:, 0:Ap]
        arc_d = y[:, Ap:2 * Ap]
        rel_h = y[:, 2 * Ap:2 * Ap + Rp]
        rel_d = y[:, 2 * Ap + Rp:2 * Ap + 2 * Rp]

        # Arc biaffine (bias_x=True, bias_y=False), weights pre-split on host.
        p_arc = (jnp.dot(arc_d, ua_main_ref[...], preferred_element_type=jnp.float32)
                 + ua_bias_ref[...])                         # (T, Ap)
        s_arc = jnp.dot(p_arc, arc_h.T, preferred_element_type=jnp.float32)  # (T, T)
        m = mask_ref[0]                                      # (1, T)
        s_arc_ref[0] = jnp.where(m > 0, s_arc, -jnp.inf)     # mask head columns

        rel_d_sc[...] = rel_d
        rel_hT_sc[...] = rel_h.T                             # one transpose per batch

    # Rel biaffine for label o (bias_x=True, bias_y=True), pre-split weights.
    rel_d = rel_d_sc[...]                                    # (T, Rp)
    p = (jnp.dot(rel_d, ur_mm_ref[0], preferred_element_type=jnp.float32)
         + ur_db_ref[0])                                     # (T, Rp)
    main = jnp.dot(p, rel_hT_sc[...], preferred_element_type=jnp.float32)    # (T, T)
    ybias = jnp.sum(rel_d * ur_hb_ref[0], axis=-1, keepdims=True) + ur_bb_ref[0]
    s_rel_ref[0, 0] = main + ybias


def prepare_head_params(params):
    """Fuse MLP weights, pre-split biaffine weights, pad A/R to 128 multiples."""
    H2, A = params["w_arc_h"].shape
    R = params["w_rel_h"].shape[1]
    O = params["u_rel"].shape[0]
    Ap = _round_up(A, 128)
    Rp = _round_up(R, 128)

    def padc(w, n):            # pad columns (last dim) with zeros up to n
        return jnp.pad(w, ((0, 0),) * (w.ndim - 1) + ((0, n - w.shape[-1]),))

    w_all = jnp.concatenate(
        [padc(params["w_arc_h"], Ap), padc(params["w_arc_d"], Ap),
         padc(params["w_rel_h"], Rp), padc(params["w_rel_d"], Rp)], axis=1)
    b_all = jnp.concatenate(
        [padc(params["b_arc_h"], Ap), padc(params["b_arc_d"], Ap),
         padc(params["b_rel_h"], Rp), padc(params["b_rel_d"], Rp)], axis=1)

    u_arc = params["u_arc"]                                  # (A+1, A)
    ua_main = jnp.pad(u_arc[:A, :], ((0, Ap - A), (0, Ap - A)))
    ua_bias = padc(u_arc[A:A + 1, :], Ap)

    u_rel = params["u_rel"]                                  # (O, R+1, R+1)
    ur_mm = jnp.pad(u_rel[:, :R, :R], ((0, 0), (0, Rp - R), (0, Rp - R)))
    ur_db = padc(u_rel[:, R:R + 1, :R], Rp)                  # (O, 1, Rp) x-bias row
    ur_hb = padc(u_rel[:, :R, R][:, None, :], Rp)            # (O, 1, Rp) y-bias row
    ur_bb = u_rel[:, R:R + 1, R:R + 1]                       # (O, 1, 1)

    return dict(w_all=w_all, b_all=b_all, ua_main=ua_main, ua_bias=ua_bias,
                ur_mm=ur_mm, ur_db=ur_db, ur_hb=ur_hb, ur_bb=ur_bb,
                Ap=Ap, Rp=Rp, O=O)


def parser_head_pallas(x, mask_f, hp):
    B, T, H2 = x.shape
    Ap, Rp, O = hp["Ap"], hp["Rp"], hp["O"]
    Wtot = 2 * Ap + 2 * Rp
    mask3 = mask_f.reshape(B, 1, T)

    kernel = functools.partial(_head_kernel, Ap=Ap, Rp=Rp)
    out_shape = (jax.ShapeDtypeStruct((B, T, T), jnp.float32),
                 jax.ShapeDtypeStruct((B, O, T, T), jnp.float32))
    in_specs = [
        pl.BlockSpec((1, T, H2), lambda b, o: (b, 0, 0)),
        pl.BlockSpec((1, 1, T), lambda b, o: (b, 0, 0)),
        pl.BlockSpec((H2, Wtot), lambda b, o: (0, 0)),
        pl.BlockSpec((1, Wtot), lambda b, o: (0, 0)),
        pl.BlockSpec((Ap, Ap), lambda b, o: (0, 0)),
        pl.BlockSpec((1, Ap), lambda b, o: (0, 0)),
        pl.BlockSpec((1, Rp, Rp), lambda b, o: (o, 0, 0)),
        pl.BlockSpec((1, 1, Rp), lambda b, o: (o, 0, 0)),
        pl.BlockSpec((1, 1, Rp), lambda b, o: (o, 0, 0)),
        pl.BlockSpec((1, 1, 1), lambda b, o: (o, 0, 0)),
    ]
    out_specs = (
        pl.BlockSpec((1, T, T), lambda b, o: (b, 0, 0)),
        pl.BlockSpec((1, 1, T, T), lambda b, o: (b, o, 0, 0)),
    )
    # TODO(synk): for very long sequences also tile T_dep in the grid.
    s_arc, s_rel_odh = pl.pallas_call(
        kernel,
        out_shape=out_shape,
        grid=(B, O),
        in_specs=in_specs,
        out_specs=out_specs,
        scratch_shapes=[pltpu.VMEM((T, Rp), jnp.float32),
                        pltpu.VMEM((Rp, T), jnp.float32)],
        compiler_params=pltpu.CompilerParams(
            dimension_semantics=("parallel", "arbitrary"),
            vmem_limit_bytes=_VMEM_LIMIT),
    )(x, mask3, hp["w_all"], hp["b_all"], hp["ua_main"], hp["ua_bias"],
      hp["ur_mm"], hp["ur_db"], hp["ur_hb"], hp["ur_bb"])
    return s_arc, s_rel_odh


# ----------------------------------------------------------------------------
# Full forward pass.
# ----------------------------------------------------------------------------
def biaffine_parser_forward(params, words, tags, pad_index):
    mask = words != pad_index
    mask_f = mask.astype(jnp.float32)

    word_emb = params["word_emb"][words]
    pos_emb = params["pos_emb"][tags]
    # TODO(synk): IndependentDropout / SharedDropout / MLP dropout are identity
    # at eval time and are therefore omitted.
    x = jnp.concatenate([word_emb, pos_emb], axis=-1)

    x = bilstm_pallas(x, mask_f, params["lstm"])             # (B, T, 2H)

    hp = prepare_head_params(params)
    s_arc, s_rel_odh = parser_head_pallas(x, mask_f, hp)
    # TODO(synk): at production sizes downstream should consume the label-major
    # (B, O, T, T) layout directly to avoid this HBM transpose (O is small).
    s_rel = jnp.transpose(s_rel_odh, (0, 2, 3, 1))           # torch .permute(0,2,3,1)
    return s_arc, s_rel


# ----------------------------------------------------------------------------
# Pure-JAX references (correctness checks of the Pallas kernels).
# ----------------------------------------------------------------------------
def _lstm_direction_ref(x, mask_f, W_ih, b_ih, W_hh, b_hh, reverse):
    B, T, D = x.shape
    H = W_hh.shape[0]
    xp = (x.reshape(B * T, D) @ W_ih + b_ih).reshape(B, T, 4 * H)
    if reverse:
        xp = xp[:, ::-1]
        m = mask_f[:, ::-1]
    else:
        m = mask_f
    xp_t = jnp.transpose(xp, (1, 0, 2))
    m_t = jnp.transpose(m, (1, 0))[:, :, None]

    def step(carry, inp):
        h, c = carry
        xpt, mt = inp
        gates = xpt + h @ W_hh + b_hh
        i, f, g, o = jnp.split(gates, 4, axis=-1)            # PyTorch order i,f,g,o
        i, f, o = jax.nn.sigmoid(i), jax.nn.sigmoid(f), jax.nn.sigmoid(o)
        g = jnp.tanh(g)
        c_new = f * c + i * g
        h_new = o * jnp.tanh(c_new)
        h = mt * h_new + (1.0 - mt) * h
        c = mt * c_new + (1.0 - mt) * c
        return (h, c), h * mt

    init = (jnp.zeros((B, H), jnp.float32), jnp.zeros((B, H), jnp.float32))
    _, outs = lax.scan(step, init, (xp_t, m_t))
    outs = jnp.transpose(outs, (1, 0, 2))
    if reverse:
        outs = outs[:, ::-1]
    return outs


def bilstm_ref(x, mask_f, layers):
    h = x
    for layer in layers:
        fw = _lstm_direction_ref(h, mask_f, layer["fw"]["W_ih"], layer["fw"]["b_ih"],
                                 layer["fw"]["W_hh"], layer["fw"]["b_hh"], False)
        bw = _lstm_direction_ref(h, mask_f, layer["bw"]["W_ih"], layer["bw"]["b_ih"],
                                 layer["bw"]["W_hh"], layer["bw"]["b_hh"], True)
        h = jnp.concatenate([fw, bw], axis=-1)
    return h


def head_ref(x, mask, params):
    def mlp(w, b):
        y = x @ w + b
        return jnp.where(y > 0, y, 0.1 * y)

    arc_h = mlp(params["w_arc_h"], params["b_arc_h"])
    arc_d = mlp(params["w_arc_d"], params["b_arc_d"])
    rel_h = mlp(params["w_rel_h"], params["b_rel_h"])
    rel_d = mlp(params["w_rel_d"], params["b_rel_d"])

    ones = jnp.ones(arc_d.shape[:-1] + (1,), jnp.float32)
    xd = jnp.concatenate([arc_d, ones], -1)
    s_arc = jnp.einsum("bxi,ij,byj->bxy", xd, params["u_arc"], arc_h)
    s_arc = jnp.where(mask[:, None, :], s_arc, -jnp.inf)

    xdr = jnp.concatenate([rel_d, ones], -1)
    xhr = jnp.concatenate([rel_h, ones], -1)
    s_rel = jnp.einsum("bxi,oij,byj->bxyo", xdr, params["u_rel"], xhr)
    return s_arc, s_rel


def init_params(key, cfg):
    def nrm(key, shape, scale=0.1):
        return scale * jax.random.normal(key, shape, jnp.float32)

    keys = iter(jax.random.split(key, 64))
    H = cfg["lstm_hidden"]
    A, R, O = cfg["mlp_arc"], cfg["mlp_rel"], cfg["rel_num"]
    in_dim = cfg["word_dim"] + cfg["pos_dim"]

    layers = []
    d = in_dim
    for _ in range(cfg["lstm_layers"]):
        layer = {}
        for direction in ("fw", "bw"):
            layer[direction] = {
                "W_ih": nrm(next(keys), (d, 4 * H)),
                "b_ih": nrm(next(keys), (1, 4 * H)),
                "W_hh": nrm(next(keys), (H, 4 * H)),
                "b_hh": nrm(next(keys), (1, 4 * H)),
            }
        layers.append(layer)
        d = 2 * H

    params = {
        "word_emb": nrm(next(keys), (cfg["word_num"], cfg["word_dim"])),
        "pos_emb": nrm(next(keys), (cfg["pos_num"], cfg["pos_dim"])),
        "lstm": layers,
        "w_arc_h": nrm(next(keys), (2 * H, A)), "b_arc_h": nrm(next(keys), (1, A)),
        "w_arc_d": nrm(next(keys), (2 * H, A)), "b_arc_d": nrm(next(keys), (1, A)),
        "w_rel_h": nrm(next(keys), (2 * H, R)), "b_rel_h": nrm(next(keys), (1, R)),
        "w_rel_d": nrm(next(keys), (2 * H, R)), "b_rel_d": nrm(next(keys), (1, R)),
        "u_arc": nrm(next(keys), (A + 1, A)),
        "u_rel": nrm(next(keys), (O, R + 1, R + 1)),
    }
    return params


if __name__ == "__main__":
    cfg = dict(word_num=100, word_dim=16, pos_num=20, pos_dim=16,
               lstm_hidden=32, lstm_layers=2,
               mlp_arc=32, mlp_rel=32, rel_num=4, pad_index=0)
    B, T = 2, 8

    key = jax.random.PRNGKey(0)
    kp, kw, kt = jax.random.split(key, 3)
    params = init_params(kp, cfg)

    words = jax.random.randint(kw, (B, T), 1, cfg["word_num"], dtype=jnp.int32)
    words = words.at[0, 6:].set(cfg["pad_index"])
    words = words.at[1, 4:].set(cfg["pad_index"])
    tags = jax.random.randint(kt, (B, T), 0, cfg["pos_num"], dtype=jnp.int32)

    fwd = jax.jit(lambda p, w, t: biaffine_parser_forward(p, w, t, cfg["pad_index"]))
    s_arc, s_rel = fwd(params, words, tags)
    jax.block_until_ready((s_arc, s_rel))

    # --- correctness checks against pure-JAX references ---------------------
    mask = words != cfg["pad_index"]
    mask_f = mask.astype(jnp.float32)
    xin = jnp.concatenate([params["word_emb"][words], params["pos_emb"][tags]], -1)

    x_pl = bilstm_pallas(xin, mask_f, params["lstm"])
    x_rf = bilstm_ref(xin, mask_f, params["lstm"])
    assert np.allclose(np.asarray(x_pl), np.asarray(x_rf), rtol=1e-2, atol=1e-3), \
        "Pallas BiLSTM mismatch"

    s_arc_ref_v, s_rel_ref_v = head_ref(x_pl, mask, params)
    s_arc_np, s_arc_ref_np = np.asarray(s_arc), np.asarray(s_arc_ref_v)
    assert np.array_equal(np.isinf(s_arc_np), np.isinf(s_arc_ref_np))
    fin = np.isfinite(s_arc_ref_np)
    assert np.allclose(s_arc_np[fin], s_arc_ref_np[fin], rtol=1e-3, atol=1e-4)
    assert np.allclose(np.asarray(s_rel), np.asarray(s_rel_ref_v),
                       rtol=1e-3, atol=1e-4)
    assert s_arc.shape == (B, T, T)
    assert s_rel.shape == (B, T, T, cfg["rel_num"])

    print("KERNEL_OK")
</pallas_src>

<mosaic_0001>
module attributes {stable_mosaic.version = 11 : i64} {
  func.func @_linear_kernel(%arg0: i32, %arg1: memref<16x32xf32, #tpu.memory_space<vmem>>, %arg2: memref<32x256xf32, #tpu.memory_space<vmem>>, %arg3: memref<1x256xf32, #tpu.memory_space<vmem>>, %arg4: memref<16x256xf32, #tpu.memory_space<vmem>>) attributes {dimension_semantics = [#tpu.dimension_semantics<parallel>], iteration_bounds = array<i64: 1>, scalar_prefetch = 0 : i64, scratch_operands = 0 : i64, tpu.core_type = #tpu.core_type<tc>, window_params = [{transform_indices = @transform_0, window_bounds = array<i64: 16, 32>}, {pipeline_mode = #tpu.pipeline_mode<synchronous>, transform_indices = @transform_1, window_bounds = array<i64: 32, 256>}, {pipeline_mode = #tpu.pipeline_mode<synchronous>, transform_indices = @transform_2, window_bounds = array<i64: 1, 256>}, {transform_indices = @transform_3, window_bounds = array<i64: 16, 256>}]} {
    %c0 = arith.constant 0 : index
    %c0_0 = arith.constant 0 : index
    %0 = vector.load %arg1[%c0, %c0_0] : memref<16x32xf32, #tpu.memory_space<vmem>>, vector<16x32xf32>
    %c0_1 = arith.constant 0 : index
    %c0_2 = arith.constant 0 : index
    %1 = vector.load %arg2[%c0_1, %c0_2] : memref<32x256xf32, #tpu.memory_space<vmem>>, vector<32x256xf32>
    %cst = arith.constant dense<0.000000e+00> : vector<16x256xf32>
    %2 = tpu.matmul %0, %1, %cst {dimension_numbers = #tpu.dot_dimension_numbers<[1], [0], [0], [1], [0, 0, 1, 1], [], []>} : vector<16x32xf32>, vector<32x256xf32>, vector<16x256xf32> -> vector<16x256xf32>
    %c0_3 = arith.constant 0 : index
    %c0_4 = arith.constant 0 : index
    %3 = vector.load %arg3[%c0_3, %c0_4] : memref<1x256xf32, #tpu.memory_space<vmem>>, vector<1x256xf32>
    %4 = vector.broadcast %3 : vector<1x256xf32> to vector<16x256xf32>
    %5 = arith.addf %2, %4 : vector<16x256xf32>
    %c0_5 = arith.constant 0 : index
    %c0_6 = arith.constant 0 : index
    %6 = vector.load %arg4[%c0_5, %c0_6] : memref<16x256xf32, #tpu.memory_space<vmem>>, vector<16x256xf32>
    tpu.vector_store %arg4[%c0_5, %c0_6], %5 {strides = array<i32>} : memref<16x256xf32, #tpu.memory_space<vmem>>, vector<16x256xf32>,
    return
  }
  func.func @transform_0(%arg0: i32) -> (i32, i32) {
    %c0_i32 = arith.constant 0 : i32
    %c0_i32_0 = arith.constant 0 : i32
    return %arg0, %c0_i32 : i32, i32
  }
  func.func @transform_1(%arg0: i32) -> (i32, i32) {
    %c0_i32 = arith.constant 0 : i32
    %c0_i32_0 = arith.constant 0 : i32
    %c0_i32_1 = arith.constant 0 : i32
    return %c0_i32, %c0_i32_0 : i32, i32
  }
  func.func @transform_2(%arg0: i32) -> (i32, i32) {
    %c0_i32 = arith.constant 0 : i32
    %c0_i32_0 = arith.constant 0 : i32
    %c0_i32_1 = arith.constant 0 : i32
    return %c0_i32, %c0_i32_0 : i32, i32
  }
  func.func @transform_3(%arg0: i32) -> (i32, i32) {
    %c0_i32 = arith.constant 0 : i32
    %c0_i32_0 = arith.constant 0 : i32
    return %arg0, %c0_i32 : i32, i32
  }
}

module attributes {stable_mosaic.version = 11 : i64} {
  func.func @_bilstm_layer_kernel(%arg0: i32, %arg1: memref<1x2x256xf32, #tpu.memory_space<vmem>>, %arg2: memref<1x2x2xf32, #tpu.memory_space<vmem>>, %arg3: memref<64x256xf32, #tpu.memory_space<vmem>>, %arg4: memref<1x256xf32, #tpu.memory_space<vmem>>, %arg5: memref<1x2x32xf32, #tpu.memory_space<vmem>>, %arg6: memref<1x2x32xf32, #tpu.memory_space<vmem>>, %arg7: memref<2x64xf32, #tpu.memory_space<vmem>>, %arg8: memref<2x64xf32, #tpu.memory_space<vmem>>) attributes {dimension_semantics = [#tpu.dimension_semantics<arbitrary>], iteration_bounds = array<i64: 8>, scalar_prefetch = 0 : i64, scratch_operands = 2 : i64, tpu.core_type = #tpu.core_type<tc>, window_params = [{transform_indices = @transform_0, window_bounds = array<i64: 1, 2, 256>}, {transform_indices = @transform_1, window_bounds = array<i64: 1, 2, 2>}, {pipeline_mode = #tpu.pipeline_mode<synchronous>, transform_indices = @transform_2, window_bounds = array<i64: 64, 256>}, {pipeline_mode = #tpu.pipeline_mode<synchronous>, transform_indices = @transform_3, window_bounds = array<i64: 1, 256>}, {transform_indices = @transform_4, window_bounds = array<i64: 1, 2, 32>}, {transform_indices = @transform_5, window_bounds = array<i64: 1, 2, 32>}]} {
    %c0_i32 = arith.constant 0 : i32
    %0 = arith.cmpi eq, %arg0, %c0_i32 : i32
    %1 = arith.extui %0 : i1 to i32
    %c0_i32_0 = arith.constant 0 : i32
    %2 = arith.cmpi ne, %1, %c0_i32_0 : i32
    scf.if %2 {
      %cst_33 = arith.constant 0.000000e+00 : f32
      %70 = vector.broadcast %cst_33 : f32 to vector<2x64xf32>
      %c0_34 = arith.constant 0 : index
      %c0_35 = arith.constant 0 : index
      %71 = vector.load %arg7[%c0_34, %c0_35] : memref<2x64xf32, #tpu.memory_space<vmem>>, vector<2x64xf32>
      tpu.vector_store %arg7[%c0_34, %c0_35], %70 {strides = array<i32>} : memref<2x64xf32, #tpu.memory_space<vmem>>, vector<2x64xf32>,
      %cst_36 = arith.constant 0.000000e+00 : f32
      %72 = vector.broadcast %cst_36 : f32 to vector<2x64xf32>
      %c0_37 = arith.constant 0 : index
      %c0_38 = arith.constant 0 : index
      %73 = vector.load %arg8[%c0_37, %c0_38] : memref<2x64xf32, #tpu.memory_space<vmem>>, vector<2x64xf32>
      tpu.vector_store %arg8[%c0_37, %c0_38], %72 {strides = array<i32>} : memref<2x64xf32, #tpu.memory_space<vmem>>, vector<2x64xf32>,
    } else {
    }
    %c0 = arith.constant 0 : index
    %c0_1 = arith.constant 0 : index
    %c0_2 = arith.constant 0 : index
    %3 = vector.load %arg1[%c0, %c0_1, %c0_2] : memref<1x2x256xf32, #tpu.memory_space<vmem>>, vector<1x2x256xf32>
    %4 = vector.shape_cast %3 : vector<1x2x256xf32> to vector<2x256xf32>
    %c0_3 = arith.constant 0 : index
    %c0_4 = arith.constant 0 : index
    %5 = vector.load %arg7[%c0_3, %c0_4] : memref<2x64xf32, #tpu.memory_space<vmem>>, vector<2x64xf32>
    %c0_5 = arith.constant 0 : index
    %c0_6 = arith.constant 0 : index
    %6 = vector.load %arg3[%c0_5, %c0_6] : memref<64x256xf32, #tpu.memory_space<vmem>>, vector<64x256xf32>
    %cst = arith.constant dense<0.000000e+00> : vector<2x256xf32>
    %7 = tpu.matmul %5, %6, %cst {dimension_numbers = #tpu.dot_dimension_numbers<[1], [0], [0], [1], [0, 0, 1, 1], [], []>} : vector<2x64xf32>, vector<64x256xf32>, vector<2x256xf32> -> vector<2x256xf32>
    %8 = arith.addf %4, %7 : vector<2x256xf32>
    %c0_7 = arith.constant 0 : index
    %c0_8 = arith.constant 0 : index
    %9 = vector.load %arg4[%c0_7, %c0_8] : memref<1x256xf32, #tpu.memory_space<vmem>>, vector<1x256xf32>
    %10 = vector.broadcast %9 : vector<1x256xf32> to vector<2x256xf32>
    %11 = arith.addf %8, %10 : vector<2x256xf32>
    %12 = vector.extract_strided_slice %11 {offsets = [0, 0], sizes = [2, 64], strides = [1, 1]} : vector<2x256xf32> to vector<2x64xf32>
    %13 = arith.negf %12 : vector<2x64xf32>
    %14 = math.exp %13 : vector<2x64xf32>
    %cst_9 = arith.constant 1.000000e+00 : f32
    %15 = vector.broadcast %cst_9 : f32 to vector<2x64xf32>
    %16 = arith.addf %15, %14 : vector<2x64xf32>
    %17 = arith.divf %15, %16 : vector<2x64xf32>
    %18 = vector.extract_strided_slice %11 {offsets = [0, 64], sizes = [2, 64], strides = [1, 1]} : vector<2x256xf32> to vector<2x64xf32>
    %19 = arith.negf %18 : vector<2x64xf32>
    %20 = math.exp %19 : vector<2x64xf32>
    %cst_10 = arith.constant 1.000000e+00 : f32
    %21 = vector.broadcast %cst_10 : f32 to vector<2x64xf32>
    %22 = arith.addf %21, %20 : vector<2x64xf32>
    %23 = arith.divf %21, %22 : vector<2x64xf32>
    %24 = vector.extract_strided_slice %11 {offsets = [0, 128], sizes = [2, 64], strides = [1, 1]} : vector<2x256xf32> to vector<2x64xf32>
    %25 = math.tanh %24 : vector<2x64xf32>
    %26 = vector.extract_strided_slice %11 {offsets = [0, 192], sizes = [2, 64], strides = [1, 1]} : vector<2x256xf32> to vector<2x64xf32>
    %27 = arith.negf %26 : vector<2x64xf32>
    %28 = math.exp %27 : vector<2x64xf32>
    %cst_11 = arith.constant 1.000000e+00 : f32
    %29 = vector.broadcast %cst_11 : f32 to vector<2x64xf32>
    %30 = arith.addf %29, %28 : vector<2x64xf32>
    %31 = arith.divf %29, %30 : vector<2x64xf32>
    %c0_12 = arith.constant 0 : index
    %c0_13 = arith.constant 0 : index
    %32 = vector.load %arg8[%c0_12, %c0_13] : memref<2x64xf32, #tpu.memory_space<vmem>>, vector<2x64xf32>
    %33 = arith.mulf %23, %32 : vector<2x64xf32>
    %34 = arith.mulf %17, %25 : vector<2x64xf32>
    %35 = arith.addf %33, %34 : vector<2x64xf32>
    %36 = math.tanh %35 : vector<2x64xf32>
    %37 = arith.mulf %31, %36 : vector<2x64xf32>
    %c0_14 = arith.constant 0 : index
    %c0_15 = arith.constant 0 : index
    %c0_16 = arith.constant 0 : index
    %38 = vector.load %arg2[%c0_14, %c0_15, %c0_16] : memref<1x2x2xf32, #tpu.memory_space<vmem>>, vector<1x2x2xf32>
    %39 = vector.shape_cast %38 : vector<1x2x2xf32> to vector<2x2xf32>
    %40 = vector.extract_strided_slice %39 {offsets = [0, 0], sizes = [2, 1], strides = [1, 1]} : vector<2x2xf32> to vector<2x1xf32>
    %41 = vector.shape_cast %40 : vector<2x1xf32> to vector<2x1xf32>
    %42 = vector.broadcast %41 : vector<2x1xf32> to vector<2x32xf32>
    %43 = vector.extract_strided_slice %39 {offsets = [0, 1], sizes = [2, 1], strides = [1, 1]} : vector<2x2xf32> to vector<2x1xf32>
    %44 = vector.shape_cast %43 : vector<2x1xf32> to vector<2x1xf32>
    %45 = vector.broadcast %44 : vector<2x1xf32> to vector<2x32xf32>
    %46 = tpu.concatenate %42, %45 in 1 : vector<2x32xf32>, vector<2x32xf32> -> vector<2x64xf32>
    %47 = arith.mulf %46, %37 : vector<2x64xf32>
    %cst_17 = arith.constant 1.000000e+00 : f32
    %48 = vector.broadcast %cst_17 : f32 to vector<2x64xf32>
    %49 = arith.subf %48, %46 : vector<2x64xf32>
    %c0_18 = arith.constant 0 : index
    %c0_19 = arith.constant 0 : index
    %50 = vector.load %arg7[%c0_18, %c0_19] : memref<2x64xf32, #tpu.memory_space<vmem>>, vector<2x64xf32>
    %51 = arith.mulf %49, %50 : vector<2x64xf32>
    %52 = arith.addf %47, %51 : vector<2x64xf32>
    %53 = arith.mulf %46, %35 : vector<2x64xf32>
    %cst_20 = arith.constant 1.000000e+00 : f32
    %54 = vector.broadcast %cst_20 : f32 to vector<2x64xf32>
    %55 = arith.subf %54, %46 : vector<2x64xf32>
    %c0_21 = arith.constant 0 : index
    %c0_22 = arith.constant 0 : index
    %56 = vector.load %arg8[%c0_21, %c0_22] : memref<2x64xf32, #tpu.memory_space<vmem>>, vector<2x64xf32>
    %57 = arith.mulf %55, %56 : vector<2x64xf32>
    %58 = arith.addf %53, %57 : vector<2x64xf32>
    %c0_23 = arith.constant 0 : index
    %c0_24 = arith.constant 0 : index
    %59 = vector.load %arg7[%c0_23, %c0_24] : memref<2x64xf32, #tpu.memory_space<vmem>>, vector<2x64xf32>
    tpu.vector_store %arg7[%c0_23, %c0_24], %52 {strides = array<i32>} : memref<2x64xf32, #tpu.memory_space<vmem>>, vector<2x64xf32>,
    %c0_25 = arith.constant 0 : index
    %c0_26 = arith.constant 0 : index
    %60 = vector.load %arg8[%c0_25, %c0_26] : memref<2x64xf32, #tpu.memory_space<vmem>>, vector<2x64xf32>
    tpu.vector_store %arg8[%c0_25, %c0_26], %58 {strides = array<i32>} : memref<2x64xf32, #tpu.memory_space<vmem>>, vector<2x64xf32>,
    %61 = arith.mulf %52, %46 : vector<2x64xf32>
    %62 = vector.extract_strided_slice %61 {offsets = [0, 0], sizes = [2, 32], strides = [1, 1]} : vector<2x64xf32> to vector<2x32xf32>
    %c0_27 = arith.constant 0 : index
    %c0_28 = arith.constant 0 : index
    %c0_29 = arith.constant 0 : index
    %63 = vector.load %arg5[%c0_27, %c0_28, %c0_29] : memref<1x2x32xf32, #tpu.memory_space<vmem>>, vector<1x2x32xf32>
    %64 = vector.shape_cast %63 : vector<1x2x32xf32> to vector<2x32xf32>
    %65 = vector.shape_cast %62 : vector<2x32xf32> to vector<1x2x32xf32>
    tpu.vector_store %arg5[%c0_27, %c0_28, %c0_29], %65 {strides = array<i32>} : memref<1x2x32xf32, #tpu.memory_space<vmem>>, vector<1x2x32xf32>,
    %66 = vector.extract_strided_slice %61 {offsets = [0, 32], sizes = [2, 32], strides = [1, 1]} : vector<2x64xf32> to vector<2x32xf32>
    %c0_30 = arith.constant 0 : index
    %c0_31 = arith.constant 0 : index
    %c0_32 = arith.constant 0 : index
    %67 = vector.load %arg6[%c0_30, %c0_31, %c0_32] : memref<1x2x32xf32, #tpu.memory_space<vmem>>, vector<1x2x32xf32>
    %68 = vector.shape_cast %67 : vector<1x2x32xf32> to vector<2x32xf32>
    %69 = vector.shape_cast %66 : vector<2x32xf32> to vector<1x2x32xf32>
    tpu.vector_store %arg6[%c0_30, %c0_31, %c0_32], %69 {strides = array<i32>} : memref<1x2x32xf32, #tpu.memory_space<vmem>>, vector<1x2x32xf32>,
    return
  }
  func.func @transform_0(%arg0: i32) -> (i32, i32, i32) {
    %c0_i32 = arith.constant 0 : i32
    %c0_i32_0 = arith.constant 0 : i32
    %c0_i32_1 = arith.constant 0 : i32
    return %arg0, %c0_i32, %c0_i32_0 : i32, i32, i32
  }
  func.func @transform_1(%arg0: i32) -> (i32, i32, i32) {
    %c0_i32 = arith.constant 0 : i32
    %c0_i32_0 = arith.constant 0 : i32
    %c0_i32_1 = arith.constant 0 : i32
    return %arg0, %c0_i32, %c0_i32_0 : i32, i32, i32
  }
  func.func @transform_2(%arg0: i32) -> (i32, i32) {
    %c0_i32 = arith.constant 0 : i32
    %c0_i32_0 = arith.constant 0 : i32
    %c0_i32_1 = arith.constant 0 : i32
    return %c0_i32, %c0_i32_0 : i32, i32
  }
  func.func @transform_3(%arg0: i32) -> (i32, i32) {
    %c0_i32 = arith.constant 0 : i32
    %c0_i32_0 = arith.constant 0 : i32
    %c0_i32_1 = arith.constant 0 : i32
    return %c0_i32, %c0_i32_0 : i32, i32
  }
  func.func @transform_4(%arg0: i32) -> (i32, i32, i32) {
    %c0_i32 = arith.constant 0 : i32
    %c0_i32_0 = arith.constant 0 : i32
    %c0_i32_1 = arith.constant 0 : i32
    return %arg0, %c0_i32, %c0_i32_0 : i32, i32, i32
  }
  func.func @transform_5(%arg0: i32) -> (i32, i32, i32) {
    %c7_i32 = arith.constant 7 : i32
    %0 = arith.subi %c7_i32, %arg0 : i32
    %c0_i32 = arith.constant 0 : i32
    %c0_i32_0 = arith.constant 0 : i32
    %c0_i32_1 = arith.constant 0 : i32
    return %0, %c0_i32, %c0_i32_0 : i32, i32, i32
  }
}

module attributes {stable_mosaic.version = 11 : i64} {
  func.func @_linear_kernel(%arg0: i32, %arg1: memref<16x64xf32, #tpu.memory_space<vmem>>, %arg2: memref<64x256xf32, #tpu.memory_space<vmem>>, %arg3: memref<1x256xf32, #tpu.memory_space<vmem>>, %arg4: memref<16x256xf32, #tpu.memory_space<vmem>>) attributes {dimension_semantics = [#tpu.dimension_semantics<parallel>], iteration_bounds = array<i64: 1>, scalar_prefetch = 0 : i64, scratch_operands = 0 : i64, tpu.core_type = #tpu.core_type<tc>, window_params = [{transform_indices = @transform_0, window_bounds = array<i64: 16, 64>}, {pipeline_mode = #tpu.pipeline_mode<synchronous>, transform_indices = @transform_1, window_bounds = array<i64: 64, 256>}, {pipeline_mode = #tpu.pipeline_mode<synchronous>, transform_indices = @transform_2, window_bounds = array<i64: 1, 256>}, {transform_indices = @transform_3, window_bounds = array<i64: 16, 256>}]} {
    %c0 = arith.constant 0 : index
    %c0_0 = arith.constant 0 : index
    %0 = vector.load %arg1[%c0, %c0_0] : memref<16x64xf32, #tpu.memory_space<vmem>>, vector<16x64xf32>
    %c0_1 = arith.constant 0 : index
    %c0_2 = arith.constant 0 : index
    %1 = vector.load %arg2[%c0_1, %c0_2] : memref<64x256xf32, #tpu.memory_space<vmem>>, vector<64x256xf32>
    %cst = arith.constant dense<0.000000e+00> : vector<16x256xf32>
    %2 = tpu.matmul %0, %1, %cst {dimension_numbers = #tpu.dot_dimension_numbers<[1], [0], [0], [1], [0, 0, 1, 1], [], []>} : vector<16x64xf32>, vector<64x256xf32>, vector<16x256xf32> -> vector<16x256xf32>
    %c0_3 = arith.constant 0 : index
    %c0_4 = arith.constant 0 : index
    %3 = vector.load %arg3[%c0_3, %c0_4] : memref<1x256xf32, #tpu.memory_space<vmem>>, vector<1x256xf32>
    %4 = vector.broadcast %3 : vector<1x256xf32> to vector<16x256xf32>
    %5 = arith.addf %2, %4 : vector<16x256xf32>
    %c0_5 = arith.constant 0 : index
    %c0_6 = arith.constant 0 : index
    %6 = vector.load %arg4[%c0_5, %c0_6] : memref<16x256xf32, #tpu.memory_space<vmem>>, vector<16x256xf32>
    tpu.vector_store %arg4[%c0_5, %c0_6], %5 {strides = array<i32>} : memref<16x256xf32, #tpu.memory_space<vmem>>, vector<16x256xf32>,
    return
  }
  func.func @transform_0(%arg0: i32) -> (i32, i32) {
    %c0_i32 = arith.constant 0 : i32
    %c0_i32_0 = arith.constant 0 : i32
    return %arg0, %c0_i32 : i32, i32
  }
  func.func @transform_1(%arg0: i32) -> (i32, i32) {
    %c0_i32 = arith.constant 0 : i32
    %c0_i32_0 = arith.constant 0 : i32
    %c0_i32_1 = arith.constant 0 : i32
    return %c0_i32, %c0_i32_0 : i32, i32
  }
  func.func @transform_2(%arg0: i32) -> (i32, i32) {
    %c0_i32 = arith.constant 0 : i32
    %c0_i32_0 = arith.constant 0 : i32
    %c0_i32_1 = arith.constant 0 : i32
    return %c0_i32, %c0_i32_0 : i32, i32
  }
  func.func @transform_3(%arg0: i32) -> (i32, i32) {
    %c0_i32 = arith.constant 0 : i32
    %c0_i32_0 = arith.constant 0 : i32
    return %arg0, %c0_i32 : i32, i32
  }
}

module attributes {stable_mosaic.version = 11 : i64} {
  func.func @_head_kernel(%arg0: i32, %arg1: i32, %arg2: memref<1x8x64xf32, #tpu.memory_space<vmem>>, %arg3: memref<1x1x8xf32, #tpu.memory_space<vmem>>, %arg4: memref<64x512xf32, #tpu.memory_space<vmem>>, %arg5: memref<1x512xf32, #tpu.memory_space<vmem>>, %arg6: memref<128x128xf32, #tpu.memory_space<vmem>>, %arg7: memref<1x128xf32, #tpu.memory_space<vmem>>, %arg8: memref<1x128x128xf32, #tpu.memory_space<vmem>>, %arg9: memref<1x1x128xf32, #tpu.memory_space<vmem>>, %arg10: memref<1x1x128xf32, #tpu.memory_space<vmem>>, %arg11: memref<1x1x1xf32, #tpu.memory_space<vmem>>, %arg12: memref<1x8x8xf32, #tpu.memory_space<vmem>>, %arg13: memref<1x1x8x8xf32, #tpu.memory_space<vmem>>, %arg14: memref<8x128xf32, #tpu.memory_space<vmem>>, %arg15: memref<128x8xf32, #tpu.memory_space<vmem>>) attributes {dimension_semantics = [#tpu.dimension_semantics<parallel>, #tpu.dimension_semantics<arbitrary>], iteration_bounds = array<i64: 2, 4>, scalar_prefetch = 0 : i64, scratch_operands = 2 : i64, tpu.core_type = #tpu.core_type<tc>, window_params = [{transform_indices = @transform_0, window_bounds = array<i64: 1, 8, 64>}, {transform_indices = @transform_1, window_bounds = array<i64: 1, 1, 8>}, {pipeline_mode = #tpu.pipeline_mode<synchronous>, transform_indices = @transform_2, window_bounds = array<i64: 64, 512>}, {pipeline_mode = #tpu.pipeline_mode<synchronous>, transform_indices = @transform_3, window_bounds = array<i64: 1, 512>}, {pipeline_mode = #tpu.pipeline_mode<synchronous>, transform_indices = @transform_4, window_bounds = array<i64: 128, 128>}, {pipeline_mode = #tpu.pipeline_mode<synchronous>, transform_indices = @transform_5, window_bounds = array<i64: 1, 128>}, {transform_indices = @transform_6, window_bounds = array<i64: 1, 128, 128>}, {transform_indices = @transform_7, window_bounds = array<i64: 1, 1, 128>}, {transform_indices = @transform_8, window_bounds = array<i64: 1, 1, 128>}, {transform_indices = @transform_9, window_bounds = array<i64: 1, 1, 1>}, {transform_indices = @transform_10, window_bounds = array<i64: 1, 8, 8>}, {transform_indices = @transform_11, window_bounds = array<i64: 1, 1, 8, 8>}]} {
    %c0_i32 = arith.constant 0 : i32
    %0 = arith.cmpi eq, %arg1, %c0_i32 : i32
    %1 = arith.extui %0 : i1 to i32
    %c0_i32_0 = arith.constant 0 : i32
    %2 = arith.cmpi ne, %1, %c0_i32_0 : i32
    scf.if %2 {
      %c0_22 = arith.constant 0 : index
      %c0_23 = arith.constant 0 : index
      %c0_24 = arith.constant 0 : index
      %28 = vector.load %arg2[%c0_22, %c0_23, %c0_24] : memref<1x8x64xf32, #tpu.memory_space<vmem>>, vector<1x8x64xf32>
      %29 = vector.shape_cast %28 : vector<1x8x64xf32> to vector<8x64xf32>
      %c0_25 = arith.constant 0 : index
      %c0_26 = arith.constant 0 : index
      %30 = vector.load %arg4[%c0_25, %c0_26] : memref<64x512xf32, #tpu.memory_space<vmem>>, vector<64x512xf32>
      %cst_27 = arith.constant dense<0.000000e+00> : vector<8x512xf32>
      %31 = tpu.matmul %29, %30, %cst_27 {dimension_numbers = #tpu.dot_dimension_numbers<[1], [0], [0], [1], [0, 0, 1, 1], [], []>} : vector<8x64xf32>, vector<64x512xf32>, vector<8x512xf32> -> vector<8x512xf32>
      %c0_28 = arith.constant 0 : index
      %c0_29 = arith.constant 0 : index
      %32 = vector.load %arg5[%c0_28, %c0_29] : memref<1x512xf32, #tpu.memory_space<vmem>>, vector<1x512xf32>
      %33 = vector.broadcast %32 : vector<1x512xf32> to vector<8x512xf32>
      %34 = arith.addf %31, %33 : vector<8x512xf32>
      %cst_30 = arith.constant 0.000000e+00 : f32
      %35 = vector.broadcast %cst_30 : f32 to vector<8x512xf32>
      %36 = arith.cmpf ogt, %34, %35 : vector<8x512xf32>
      %cst_31 = arith.constant 1.000000e-01 : f32
      %37 = vector.broadcast %cst_31 : f32 to vector<8x512xf32>
      %38 = arith.mulf %37, %34 : vector<8x512xf32>
      %39 = arith.select %36, %34, %38 : vector<8x512xi1>, vector<8x512xf32>
      %40 = vector.extract_strided_slice %39 {offsets = [0, 0], sizes = [8, 128], strides = [1, 1]} : vector<8x512xf32> to vector<8x128xf32>
      %41 = vector.extract_strided_slice %39 {offsets = [0, 128], sizes = [8, 128], strides = [1, 1]} : vector<8x512xf32> to vector<8x128xf32>
      %42 = vector.extract_strided_slice %39 {offsets = [0, 256], sizes = [8, 128], strides = [1, 1]} : vector<8x512xf32> to vector<8x128xf32>
      %43 = vector.extract_strided_slice %39 {offsets = [0, 384], sizes = [8, 128], strides = [1, 1]} : vector<8x512xf32> to vector<8x128xf32>
      %c0_32 = arith.constant 0 : index
      %c0_33 = arith.constant 0 : index
      %44 = vector.load %arg6[%c0_32, %c0_33] : memref<128x128xf32, #tpu.memory_space<vmem>>, vector<128x128xf32>
      %cst_34 = arith.constant dense<0.000000e+00> : vector<8x128xf32>
      %45 = tpu.matmul %41, %44, %cst_34 {dimension_numbers = #tpu.dot_dimension_numbers<[1], [0], [0], [1], [0, 0, 1, 1], [], []>} : vector<8x128xf32>, vector<128x128xf32>, vector<8x128xf32> -> vector<8x128xf32>
      %c0_35 = arith.constant 0 : index
      %c0_36 = arith.constant 0 : index
      %46 = vector.load %arg7[%c0_35, %c0_36] : memref<1x128xf32, #tpu.memory_space<vmem>>, vector<1x128xf32>
      %47 = vector.broadcast %46 : vector<1x128xf32> to vector<8x128xf32>
      %48 = arith.addf %45, %47 : vector<8x128xf32>
      %49 = tpu.transpose %40, [1, 0] : vector<8x128xf32> -> vector<128x8xf32>
      %cst_37 = arith.constant dense<0.000000e+00> : vector<8x8xf32>
      %50 = tpu.matmul %48, %49, %cst_37 {dimension_numbers = #tpu.dot_dimension_numbers<[1], [0], [0], [1], [0, 0, 1, 1], [], []>} : vector<8x128xf32>, vector<128x8xf32>, vector<8x8xf32> -> vector<8x8xf32>
      %c0_38 = arith.constant 0 : index
      %c0_39 = arith.constant 0 : index
      %c0_40 = arith.constant 0 : index
      %51 = vector.load %arg3[%c0_38, %c0_39, %c0_40] : memref<1x1x8xf32, #tpu.memory_space<vmem>>, vector<1x1x8xf32>
      %52 = vector.shape_cast %51 : vector<1x1x8xf32> to vector<1x8xf32>
      %cst_41 = arith.constant 0.000000e+00 : f32
      %53 = vector.broadcast %cst_41 : f32 to vector<1x8xf32>
      %54 = arith.cmpf ogt, %52, %53 : vector<1x8xf32>
      %cst_42 = arith.constant 0xFF800000 : f32
      %55 = vector.shape_cast %54 : vector<1x8xi1> to vector<1x8xi1>
      %56 = vector.broadcast %55 : vector<1x8xi1> to vector<8x8xi1>
      %57 = vector.broadcast %cst_42 : f32 to vector<8x8xf32>
      %58 = arith.select %56, %50, %57 : vector<8x8xi1>, vector<8x8xf32>
      %c0_43 = arith.constant 0 : index
      %c0_44 = arith.constant 0 : index
      %c0_45 = arith.constant 0 : index
      %59 = vector.load %arg12[%c0_43, %c0_44, %c0_45] : memref<1x8x8xf32, #tpu.memory_space<vmem>>, vector<1x8x8xf32>
      %60 = vector.shape_cast %59 : vector<1x8x8xf32> to vector<8x8xf32>
      %61 = vector.shape_cast %58 : vector<8x8xf32> to vector<1x8x8xf32>
      tpu.vector_store %arg12[%c0_43, %c0_44, %c0_45], %61 {strides = array<i32>} : memref<1x8x8xf32, #tpu.memory_space<vmem>>, vector<1x8x8xf32>,
      %c0_46 = arith.constant 0 : index
      %c0_47 = arith.constant 0 : index
      %62 = vector.load %arg14[%c0_46, %c0_47] : memref<8x128xf32, #tpu.memory_space<vmem>>, vector<8x128xf32>
      tpu.vector_store %arg14[%c0_46, %c0_47], %43 {strides = array<i32>} : memref<8x128xf32, #tpu.memory_space<vmem>>, vector<8x128xf32>,
      %63 = tpu.transpose %42, [1, 0] : vector<8x128xf32> -> vector<128x8xf32>
      %c0_48 = arith.constant 0 : index
      %c0_49 = arith.constant 0 : index
      %64 = vector.load %arg15[%c0_48, %c0_49] : memref<128x8xf32, #tpu.memory_space<vmem>>, vector<128x8xf32>
      tpu.vector_store %arg15[%c0_48, %c0_49], %63 {strides = array<i32>} : memref<128x8xf32, #tpu.memory_space<vmem>>, vector<128x8xf32>,
    } else {
    }
    %c0 = arith.constant 0 : index
    %c0_1 = arith.constant 0 : index
    %3 = vector.load %arg14[%c0, %c0_1] : memref<8x128xf32, #tpu.memory_space<vmem>>, vector<8x128xf32>
    %c0_2 = arith.constant 0 : index
    %c0_3 = arith.constant 0 : index
    %c0_4 = arith.constant 0 : index
    %4 = vector.load %arg8[%c0_2, %c0_3, %c0_4] : memref<1x128x128xf32, #tpu.memory_space<vmem>>, vector<1x128x128xf32>
    %5 = vector.shape_cast %4 : vector<1x128x128xf32> to vector<128x128xf32>
    %cst = arith.constant dense<0.000000e+00> : vector<8x128xf32>
    %6 = tpu.matmul %3, %5, %cst {dimension_numbers = #tpu.dot_dimension_numbers<[1], [0], [0], [1], [0, 0, 1, 1], [], []>} : vector<8x128xf32>, vector<128x128xf32>, vector<8x128xf32> -> vector<8x128xf32>
    %c0_5 = arith.constant 0 : index
    %c0_6 = arith.constant 0 : index
    %c0_7 = arith.constant 0 : index
    %7 = vector.load %arg9[%c0_5, %c0_6, %c0_7] : memref<1x1x128xf32, #tpu.memory_space<vmem>>, vector<1x1x128xf32>
    %8 = vector.shape_cast %7 : vector<1x1x128xf32> to vector<1x128xf32>
    %9 = vector.broadcast %8 : vector<1x128xf32> to vector<8x128xf32>
    %10 = arith.addf %6, %9 : vector<8x128xf32>
    %c0_8 = arith.constant 0 : index
    %c0_9 = arith.constant 0 : index
    %11 = vector.load %arg15[%c0_8, %c0_9] : memref<128x8xf32, #tpu.memory_space<vmem>>, vector<128x8xf32>
    %cst_10 = arith.constant dense<0.000000e+00> : vector<8x8xf32>
    %12 = tpu.matmul %10, %11, %cst_10 {dimension_numbers = #tpu.dot_dimension_numbers<[1], [0], [0], [1], [0, 0, 1, 1], [], []>} : vector<8x128xf32>, vector<128x8xf32>, vector<8x8xf32> -> vector<8x8xf32>
    %c0_11 = arith.constant 0 : index
    %c0_12 = arith.constant 0 : index
    %c0_13 = arith.constant 0 : index
    %13 = vector.load %arg10[%c0_11, %c0_12, %c0_13] : memref<1x1x128xf32, #tpu.memory_space<vmem>>, vector<1x1x128xf32>
    %14 = vector.shape_cast %13 : vector<1x1x128xf32> to vector<1x128xf32>
    %15 = vector.broadcast %14 : vector<1x128xf32> to vector<8x128xf32>
    %16 = arith.mulf %3, %15 : vector<8x128xf32>
    %cst_14 = arith.constant dense<0.000000e+00> : vector<8xf32>
    %17 = vector.multi_reduction <add>, %16, %cst_14 [1] : vector<8x128xf32> to vector<8xf32>
    %18 = vector.shape_cast %17 : vector<8xf32> to vector<8x1xf32>
    %c0_15 = arith.constant 0 : index
    %c0_16 = arith.constant 0 : index
    %c0_17 = arith.constant 0 : index
    %19 = vector.load %arg11[%c0_15, %c0_16, %c0_17] : memref<1x1x1xf32, #tpu.memory_space<vmem>>, vector<1x1x1xf32>
    %20 = vector.shape_cast %19 : vector<1x1x1xf32> to vector<1x1xf32>
    %21 = vector.broadcast %20 : vector<1x1xf32> to vector<8x1xf32>
    %22 = arith.addf %18, %21 : vector<8x1xf32>
    %23 = vector.broadcast %22 : vector<8x1xf32> to vector<8x8xf32>
    %24 = arith.addf %12, %23 : vector<8x8xf32>
    %c0_18 = arith.constant 0 : index
    %c0_19 = arith.constant 0 : index
    %c0_20 = arith.constant 0 : index
    %c0_21 = arith.constant 0 : index
    %25 = vector.load %arg13[%c0_18, %c0_19, %c0_20, %c0_21] : memref<1x1x8x8xf32, #tpu.memory_space<vmem>>, vector<1x1x8x8xf32>
    %26 = vector.shape_cast %25 : vector<1x1x8x8xf32> to vector<8x8xf32>
    %27 = vector.shape_cast %24 : vector<8x8xf32> to vector<1x1x8x8xf32>
    tpu.vector_store %arg13[%c0_18, %c0_19, %c0_20, %c0_21], %27 {strides = array<i32>} : memref<1x1x8x8xf32, #tpu.memory_space<vmem>>, vector<1x1x8x8xf32>,
    return
  }
  func.func @transform_0(%arg0: i32, %arg1: i32) -> (i32, i32, i32) {
    %c0_i32 = arith.constant 0 : i32
    %c0_i32_0 = arith.constant 0 : i32
    %c0_i32_1 = arith.constant 0 : i32
    return %arg0, %c0_i32, %c0_i32_0 : i32, i32, i32
  }
  func.func @transform_1(%arg0: i32, %arg1: i32) -> (i32, i32, i32) {
    %c0_i32 = arith.constant 0 : i32
    %c0_i32_0 = arith.constant 0 : i32
    %c0_i32_1 = arith.constant 0 : i32
    return %arg0, %c0_i32, %c0_i32_0 : i32, i32, i32
  }
  func.func @transform_2(%arg0: i32, %arg1: i32) -> (i32, i32) {
    %c0_i32 = arith.constant 0 : i32
    %c0_i32_0 = arith.constant 0 : i32
    %c0_i32_1 = arith.constant 0 : i32
    return %c0_i32, %c0_i32_0 : i32, i32
  }
  func.func @transform_3(%arg0: i32, %arg1: i32) -> (i32, i32) {
    %c0_i32 = arith.constant 0 : i32
    %c0_i32_0 = arith.constant 0 : i32
    %c0_i32_1 = arith.constant 0 : i32
    return %c0_i32, %c0_i32_0 : i32, i32
  }
  func.func @transform_4(%arg0: i32, %arg1: i32) -> (i32, i32) {
    %c0_i32 = arith.constant 0 : i32
    %c0_i32_0 = arith.constant 0 : i32
    %c0_i32_1 = arith.constant 0 : i32
    return %c0_i32, %c0_i32_0 : i32, i32
  }
  func.func @transform_5(%arg0: i32, %arg1: i32) -> (i32, i32) {
    %c0_i32 = arith.constant 0 : i32
    %c0_i32_0 = arith.constant 0 : i32
    %c0_i32_1 = arith.constant 0 : i32
    return %c0_i32, %c0_i32_0 : i32, i32
  }
  func.func @transform_6(%arg0: i32, %arg1: i32) -> (i32, i32, i32) {
    %c0_i32 = arith.constant 0 : i32
    %c0_i32_0 = arith.constant 0 : i32
    %c0_i32_1 = arith.constant 0 : i32
    return %arg1, %c0_i32, %c0_i32_0 : i32, i32, i32
  }
  func.func @transform_7(%arg0: i32, %arg1: i32) -> (i32, i32, i32) {
    %c0_i32 = arith.constant 0 : i32
    %c0_i32_0 = arith.constant 0 : i32
    %c0_i32_1 = arith.constant 0 : i32
    return %arg1, %c0_i32, %c0_i32_0 : i32, i32, i32
  }
  func.func @transform_8(%arg0: i32, %arg1: i32) -> (i32, i32, i32) {
    %c0_i32 = arith.constant 0 : i32
    %c0_i32_0 = arith.constant 0 : i32
    %c0_i32_1 = arith.constant 0 : i32
    return %arg1, %c0_i32, %c0_i32_0 : i32, i32, i32
  }
  func.func @transform_9(%arg0: i32, %arg1: i32) -> (i32, i32, i32) {
    %c0_i32 = arith.constant 0 : i32
    %c0_i32_0 = arith.constant 0 : i32
    %c0_i32_1 = arith.constant 0 : i32
    return %arg1, %c0_i32, %c0_i32_0 : i32, i32, i32
  }
  func.func @transform_10(%arg0: i32, %arg1: i32) -> (i32, i32, i32) {
    %c0_i32 = arith.constant 0 : i32
    %c0_i32_0 = arith.constant 0 : i32
    %c0_i32_1 = arith.constant 0 : i32
    return %arg0, %c0_i32, %c0_i32_0 : i32, i32, i32
  }
  func.func @transform_11(%arg0: i32, %arg1: i32) -> (i32, i32, i32, i32) {
    %c0_i32 = arith.constant 0 : i32
    %c0_i32_0 = arith.constant 0 : i32
    %c0_i32_1 = arith.constant 0 : i32
    return %arg0, %arg1, %c0_i32, %c0_i32_0 : i32, i32, i32, i32
  }
}

</mosaic_0001>

<bundles_post_ra>
// kernel: _lambda_.5
= control target key start
LH: loop header
LB: loop body
LE: loop exit
PB: predicated region body
PF: predicated region fallthrough
CT: control target
= control target key end

     0   :  { %v143_v3 = vmov 0.0   ;;  %vm36_vm0 = vcmask 261120   ;;  %v26_v15 = vlaneseq  ;;  %s209_s1 = inlined_call_operand.vmem [shape: f32[32,256], index: 1, kind: input, shape index: {}]   ;;  %s210_s0 = inlined_call_operand.vmem [shape: f32[16,32], index: 0, kind: input, shape index: {}]   ;;  %s211_s2 = inlined_call_operand.vmem [shape: f32[1,256], index: 2, kind: input, shape index: {}]   ;;  %s212_s3 = inlined_call_operand.vmem [shape: f32[16,256], index: 3, kind: output, shape index: {}]  }
   0x1   :  { %v17_v0 = vld [vmem:[%s209_s1 + $0x8] sm:$0xff]  ;;  %v19_v1 = vld [vmem:[%s209_s1 + $0x18] sm:$0xff]  ;;  %v16_v2 = vld [vmem:[%s209_s1] sm:$0xff]  ;;  %107 = vmatprep.mubr.f32.mxu0 %v143_v3  ;;  %113 = vmatprep.mubr.f32.mxu1 %v143_v3 }
   0x2   :  { %v130_v4 = vpack.c.bf16 %v19_v1, %v17_v0  ;;  %v18_v5 = vld [vmem:[%s209_s1 + $0x10] sm:$0xff]  ;;  %v21_v6 = vld [vmem:[%s209_s1 + $0x28] sm:$0xff]  ;;  %v23_v7 = vld [vmem:[%s209_s1 + $0x38] sm:$0xff]  ;;  %v27_v16 = vshrl.u32 %v26_v15, 7 }
   0x3   :  { %v132_v8 = vpack.c.bf16 %v18_v5, %v16_v2  ;;  %v134_v9 = vpack.c.bf16 %v23_v7, %v21_v6  ;;  %v20_v10 = vld [vmem:[%s209_s1 + $0x20] sm:$0xff]  ;;  %v22_v11 = vld [vmem:[%s209_s1 + $0x30] sm:$0xff]  ;;  %v15_v14 = vld [vmem:[%s210_s0 + $0x8] sm:$0xff] }
   0x4   :  { %131 = vmatprep.subr.bf16.mxu0 %v130_v4  ;;  %138 = vmatprep.subr.bf16.mxu1 %v130_v4  ;;  %v136_v12 = vpack.c.bf16 %v22_v11, %v20_v10  ;;  %v14_v13 = vld [vmem:[%s210_s0] sm:$0xff]  ;;  %v28_v17 = vsub.s32 0, %v27_v16  ;;  %v32_v19 = vsub.s32 1, %v27_v16 }
   0x5   :  { %133 = vmatpush1.bf16.msra.mxu0 %v132_v8  ;;  %140 = vmatpush1.bf16.msra.mxu1 %v132_v8  ;;  %v24_v18 = vld [vmem:[%s211_s2] sm:$0x3] }
   0x6   :  { %135 = vmatprep.subr.bf16.mxu0 %v134_v9  ;;  %139 = vmatprep.subr.bf16.mxu1 %v134_v9  ;;  %v29_v20 = vrot.slane %v24_v18, %v28_v17  ;;  %v33_v21 = vrot.slane %v24_v18, %v32_v19 }
   0x9   :  { %137 = vmatpush1.bf16.msra.mxu0 %v136_v12  ;;  %141 = vmatpush1.bf16.msra.mxu1 %v136_v12 }
   0xc   :  { %128 = vmatmul.mubr.msk.f32.vlgmr.msra.gmra.mrb[0].mxu0 %vm36_vm0, %v14_v13  ;;  %129 = vmatmul.mubr.msk.f32.vlgmr.msra.gmra.mrb[0].mxu1 %vm36_vm0, %v15_v14 }
  0xdf   :  { %v109_v22 = vpop.f32.mrb[0].mxu0  ;;  %v115_v23 = vpop.f32.mrb[0].mxu1 }
  0xe0   :  { %v110_v24 = vadd.f32 %v109_v22, %v29_v20  ;;  %v116_v25 = vadd.f32 %v115_v23, %v29_v20  ;;  %v111_v26 = vpop.f32.mrb[1].mxu0  ;;  %v117_v27 = vpop.f32.mrb[1].mxu1 }
  0xe1   :  { %v112_v28 = vadd.f32 %v111_v26, %v33_v21  ;;  %v118_v29 = vadd.f32 %v117_v27, %v33_v21 }
  0xe2   :  { %120 = vst [vmem:[%s212_s3] sm:$0xff] %v110_v24  ;;  %122 = vst [vmem:[%s212_s3 + $0x10] sm:$0xff] %v116_v25 }
  0xe3   :  { %121 = vst [vmem:[%s212_s3 + $0x8] sm:$0xff] %v112_v28  ;;  %123 = vst [vmem:[%s212_s3 + $0x18] sm:$0xff] %v118_v29 }

// kernel: _lambda_.7
= control target key start
LH: loop header
LB: loop body
LE: loop exit
PB: predicated region body
PF: predicated region fallthrough
CT: control target
= control target key end

     0   :  { %v163_v3 = vmov 0.0   ;;  %vm44_vm0 = vcmask 523264   ;;  %v34_v27 = vlaneseq  ;;  %s253_s1 = inlined_call_operand.vmem [shape: f32[64,256], index: 1, kind: input, shape index: {}]   ;;  %s254_s0 = inlined_call_operand.vmem [shape: f32[16,64], index: 0, kind: input, shape index: {}]   ;;  %s255_s2 = inlined_call_operand.vmem [shape: f32[1,256], index: 2, kind: input, shape index: {}]   ;;  %s256_s3 = inlined_call_operand.vmem [shape: f32[16,256], index: 3, kind: output, shape index: {}]  }
   0x1   :  { %v17_v0 = vld [vmem:[%s253_s1 + $0x8] sm:$0xff]  ;;  %v19_v1 = vld [vmem:[%s253_s1 + $0x18] sm:$0xff]  ;;  %v16_v2 = vld [vmem:[%s253_s1] sm:$0xff]  ;;  %115 = vmatprep.mubr.f32.mxu0 %v163_v3  ;;  %121 = vmatprep.mubr.f32.mxu1 %v163_v3 }
   0x2   :  { %v138_v4 = vpack.c.bf16 %v19_v1, %v17_v0  ;;  %v18_v5 = vld [vmem:[%s253_s1 + $0x10] sm:$0xff]  ;;  %v21_v6 = vld [vmem:[%s253_s1 + $0x28] sm:$0xff]  ;;  %v23_v7 = vld [vmem:[%s253_s1 + $0x38] sm:$0xff]  ;;  %v35_v28 = vshrl.u32 %v34_v27, 7 }
   0x3   :  { %v140_v8 = vpack.c.bf16 %v18_v5, %v16_v2  ;;  %v142_v9 = vpack.c.bf16 %v23_v7, %v21_v6  ;;  %v20_v10 = vld [vmem:[%s253_s1 + $0x20] sm:$0xff]  ;;  %v22_v11 = vld [vmem:[%s253_s1 + $0x30] sm:$0xff]  ;;  %v25_v12 = vld [vmem:[%s253_s1 + $0x48] sm:$0xff] }
   0x4   :  { %139 = vmatprep.subr.bf16.mxu0 %v138_v4  ;;  %154 = vmatprep.subr.bf16.mxu1 %v138_v4  ;;  %v27_v13 = vld [vmem:[%s253_s1 + $0x58] sm:$0xff]  ;;  %v144_v14 = vpack.c.bf16 %v22_v11, %v20_v10  ;;  %v24_v16 = vld [vmem:[%s253_s1 + $0x40] sm:$0xff]  ;;  %v26_v17 = vld [vmem:[%s253_s1 + $0x50] sm:$0xff]  ;;  %v36_v29 = vsub.s32 0, %v35_v28  ;;  %v40_v31 = vsub.s32 1, %v35_v28 }
   0x5   :  { %141 = vmatpush1.bf16.msra.mxu0 %v140_v8  ;;  %158 = vmatpush1.bf16.msra.mxu1 %v140_v8  ;;  %v146_v15 = vpack.c.bf16 %v27_v13, %v25_v12  ;;  %v29_v18 = vld [vmem:[%s253_s1 + $0x68] sm:$0xff]  ;;  %v31_v19 = vld [vmem:[%s253_s1 + $0x78] sm:$0xff]  ;;  %v148_v20 = vpack.c.bf16 %v26_v17, %v24_v16  ;;  %v28_v22 = vld [vmem:[%s253_s1 + $0x60] sm:$0xff] }
   0x6   :  { %143 = vmatprep.subr.bf16.mxu0 %v142_v9  ;;  %155 = vmatprep.subr.bf16.mxu1 %v142_v9  ;;  %v150_v21 = vpack.c.bf16 %v31_v19, %v29_v18  ;;  %v30_v23 = vld [vmem:[%s253_s1 + $0x70] sm:$0xff]  ;;  %v14_v25 = vld [vmem:[%s254_s0] sm:$0xff]  ;;  %v15_v26 = vld [vmem:[%s254_s0 + $0x8] sm:$0xff] }
   0x7   :  { %v152_v24 = vpack.c.bf16 %v30_v23, %v28_v22  ;;  %v32_v30 = vld [vmem:[%s255_s2] sm:$0x3] }
   0x8   :  { %v37_v32 = vrot.slane %v32_v30, %v36_v29  ;;  %v41_v33 = vrot.slane %v32_v30, %v40_v31 }
   0x9   :  { %145 = vmatpush1.bf16.msra.mxu0 %v144_v14  ;;  %159 = vmatpush1.bf16.msra.mxu1 %v144_v14 }
   0xa   :  { %147 = vmatprep.subr.bf16.mxu0 %v146_v15  ;;  %156 = vmatprep.subr.bf16.mxu1 %v146_v15 }
   0xd   :  { %149 = vmatpush1.bf16.msra.mxu0 %v148_v20  ;;  %160 = vmatpush1.bf16.msra.mxu1 %v148_v20 }
   0xe   :  { %151 = vmatprep.subr.bf16.mxu0 %v150_v21  ;;  %157 = vmatprep.subr.bf16.mxu1 %v150_v21 }
  0x11   :  { %153 = vmatpush1.bf16.msra.mxu0 %v152_v24  ;;  %161 = vmatpush1.bf16.msra.mxu1 %v152_v24 }
  0x14   :  { %136 = vmatmul.mubr.msk.f32.vlgmr.msra.gmra.mrb[0].mxu0 %vm44_vm0, %v14_v25  ;;  %137 = vmatmul.mubr.msk.f32.vlgmr.msra.gmra.mrb[0].mxu1 %vm44_vm0, %v15_v26 }
  0xe7   :  { %v117_v34 = vpop.f32.mrb[0].mxu0  ;;  %v123_v35 = vpop.f32.mrb[0].mxu1 }
  0xe8   :  { %v118_v36 = vadd.f32 %v117_v34, %v37_v32  ;;  %v124_v37 = vadd.f32 %v123_v35, %v37_v32  ;;  %v119_v38 = vpop.f32.mrb[1].mxu0  ;;  %v125_v39 = vpop.f32.mrb[1].mxu1 }
  0xe9   :  { %v120_v40 = vadd.f32 %v119_v38, %v41_v33  ;;  %v126_v41 = vadd.f32 %v125_v39, %v41_v33 }
  0xea   :  { %128 = vst [vmem:[%s256_s3] sm:$0xff] %v118_v36  ;;  %130 = vst [vmem:[%s256_s3 + $0x10] sm:$0xff] %v124_v37 }
  0xeb   :  { %129 = vst [vmem:[%s256_s3 + $0x8] sm:$0xff] %v120_v40  ;;  %131 = vst [vmem:[%s256_s3 + $0x18] sm:$0xff] %v126_v41 }

// kernel: _lambda_.6
= control target key start
LH: loop header
LB: loop body
LE: loop exit
PB: predicated region body
PF: predicated region fallthrough
CT: control target
= control target key end

     0   :  { %s680_s18 = smov 0   ;;  %s775_s0 = inlined_call_operand.vmem [shape: f32[8,2,256], index: 0, kind: input, shape index: {}]   ;;  %s776_s1 = inlined_call_operand.vmem [shape: f32[8,2,2], index: 1, kind: input, shape index: {}]   ;;  %s777_s2 = inlined_call_operand.vmem [shape: f32[64,256], index: 2, kind: input, shape index: {}]   ;;  %s778_s3 = inlined_call_operand.vmem [shape: f32[1,256], index: 3, kind: input, shape index: {}]   ;;  %s779_s4 = inlined_call_operand.vmem [shape: f32[8,2,32], index: 4, kind: output, shape index: {0}]   ;;  %s780_s5 = inlined_call_operand.vmem [shape: f32[8,2,32], index: 5, kind: output, shape index: {1}]  }
   0x1 LB: > { %s573_s19 = sadd.s32 4294967295, %s641_s18   ;;  %p577_p0 = scmp.ge.s32.totalorder %s641_s18, 1  ;;  %s641_s18 = sphi %s680_s18, %s16_s18  }
   0x2   : > { %p201_p1 = scmp.lt.s32.totalorder %s641_s18, 9 }
   0x4   : > { %p202_p2 = pnand %p577_p0, %p201_p1 }
   0x5   : > { %p237_p3 = scmp.lt.s32.totalorder (!%p202_p2), %s573_s19, 7  ;;  %s250_s20 = ssub.s32 (!%p202_p2), 7, %s573_s19 }
   0x6   : > { %205 = sbr.rel (%p202_p2) target bundleno = 656 (0x290), region = 36  ;;  %p251_p4 = scmp.lt.s32.totalorder (!%p202_p2), %s250_s20, 7 }
   0x7   : > { %p583_p5 = scmp.ne.s32.totalorder (!%p202_p2), %s573_s19, 0 }
   0xd   : > { %s238_s21 = scalar_select %p237_p3, %s573_s19, 7 }
   0xe   : > { %s782_s20 = smov (!%p251_p4, %s250_s20), 7  ;;  %259 = sbr.rel (%p583_p5) target bundleno = 21 (0x15), region = 40 }
   0xf   : > { %s589_s22 = sshll.u32 %s238_s21, 2  ;;  %s580_s23 = sshll.u32 %s238_s21, 1  ;;  %vm260_vm0 = vcmask (!%p583_p5), 517120   ;;  %v643_v0 = vmov (!%p583_p5), 0.0  }
  0x10   : > { %s691_s26 = scalar_lea.vmem %s775_s0, %s589_s22  ;;  %s696_s29 = scalar_lea.vmem %s776_s1, %s580_s23  ;;  %261 = vst.msk [vmem:[#allocation2] sm:$0x3] (!%p583_p5), %vm260_vm0, %v643_v0  ;;  %262 = vst.msk [vmem:[#allocation3] sm:$0x3] (!%p583_p5), %vm260_vm0, %v643_v0 }
  0x11   : > { %s701_s7 = scalar_lea.vmem %s779_s4, %s580_s23  ;;  %s582_s8 = sshll.u32 %s782_s20, 1 }
  0x12   : > { %s706_s11 = scalar_lea.vmem %s780_s5, %s582_s8 }
  0x15 PF: > { %v266_v1 = vld [vmem:[%s777_s2 + $0x8] sm:$0xff]  ;;  %v268_v2 = vld [vmem:[%s777_s2 + $0x18] sm:$0xff]  ;;  %v265_v3 = vld [vmem:[%s777_s2] sm:$0xff]  ;;  %v362_v4 = vlaneseq  ;;  %v644_v9 = vmov 0.0   ;;  %v645_v15 = vmov 1983009808  }
  0x16   : > { %v590_v5 = vpack.c.bf16 %v268_v2, %v266_v1  ;;  %v267_v6 = vld [vmem:[%s777_s2 + $0x10] sm:$0xff]  ;;  %v270_v7 = vld [vmem:[%s777_s2 + $0x28] sm:$0xff]  ;;  %v272_v8 = vld [vmem:[%s777_s2 + $0x38] sm:$0xff]  ;;  %349 = vmatprep.mubr.f32.mxu0 %v644_v9  ;;  %v360_v16 = vunpack.c.l.s4 %v645_v15  ;;  %s646_s25 = smov 64   ;;  %vm281_vm1 = vcmask 523264   ;;  %v647_v51 = vmov 1  }
  0x17   : > { %v592_v10 = vpack.c.bf16 %v267_v6, %v265_v3  ;;  %v594_v11 = vpack.c.bf16 %v272_v8, %v270_v7  ;;  %v269_v12 = vld [vmem:[%s777_s2 + $0x20] sm:$0xff]  ;;  %v271_v13 = vld [vmem:[%s777_s2 + $0x30] sm:$0xff]  ;;  %v274_v14 = vld [vmem:[%s777_s2 + $0x48] sm:$0xff]  ;;  %v363_v17 = vshrl.u32 %v362_v4, 7  ;;  %622 = vset.pattern.permute.xlu0 %v647_v51  ;;  %v648_v52 = vmov 0  }
  0x18   : > { %591 = vmatprep.subr.bf16.mxu0 %v590_v5  ;;  %v276_v18 = vld [vmem:[%s777_s2 + $0x58] sm:$0xff]  ;;  %v596_v19 = vpack.c.bf16 %v271_v13, %v269_v12  ;;  %v361_v20 = vunpack.c.0.s8 %v360_v16  ;;  %v273_v22 = vld [vmem:[%s777_s2 + $0x40] sm:$0xff]  ;;  %v275_v23 = vld [vmem:[%s777_s2 + $0x50] sm:$0xff]  ;;  %621 = vset.pattern.permute.xlu1 %v648_v52  ;;  %vm443_vm2 = vcmask 261120   ;;  %vm463_vm3 = vcmask 517120  }
  0x19   : > { %593 = vmatpush1.bf16.msra.mxu0 %v592_v10  ;;  %v598_v21 = vpack.c.bf16 %v276_v18, %v274_v14  ;;  %v744_v24 = vld [vmem:[#allocation3] sm:$0x3]  ;;  %v278_v25 = vld [vmem:[%s777_s2 + $0x68] sm:$0xff]  ;;  %v280_v26 = vld [vmem:[%s777_s2 + $0x78] sm:$0xff]  ;;  %v600_v28 = vpack.c.bf16 %v275_v23, %v273_v22  ;;  %v372_v35 = vsub.s32 0, %v363_v17  ;;  %v376_v36 = vsub.s32 1, %v363_v17 }
  0x1a   : > { %595 = vmatprep.subr.bf16.mxu0 %v594_v11  ;;  %v364_v27 = vsub.s32 %v361_v20, %v363_v17  ;;  %v602_v30 = vpack.c.bf16 %v280_v26, %v278_v25  ;;  %v277_v31 = vld [vmem:[%s777_s2 + $0x60] sm:$0xff]  ;;  %v279_v32 = vld [vmem:[%s777_s2 + $0x70] sm:$0xff]  ;;  %vm467_vm4 = vcmask 254976  }
  0x1b   : > { %v604_v33 = vpack.c.bf16 %v279_v32, %v277_v31  ;;  %v264_v34 = vld [vmem:[#allocation2] sm:$0x3] }
  0x1c   : > { %v416_v29 = vrot.slane %v744_v24, %v364_v27  ;;  %v368_v37 = vld [vmem:[%s778_s3] sm:$0x3] }
  0x1d   : > { %597 = vmatpush1.bf16.msra.mxu0 %v596_v19  ;;  %v373_v38 = vrot.slane %v368_v37, %v372_v35  ;;  %v377_v39 = vrot.slane %v368_v37, %v376_v36  ;;  %v263_v44 = vld [vmem:[%s691_s26] sm:$0xf]  ;;  %s649_s26 = smov 96  }
  0x1e   : > { %599 = vmatprep.subr.bf16.mxu0 %v598_v21  ;;  %417 = vrot.lane.b32.xlu0 %v416_v29, %s646_s25  ;;  %v433_v50 = vld [vmem:[%s696_s29] sm:$0x3] }
  0x1f   : > { %v378_v41 = vcombine.low %v373_v38, %v377_v39 }
  0x21   : > { %601 = vmatpush1.bf16.msra.mxu0 %v600_v28  ;;  %v385_v46 = vrot.slane %v378_v41, %v364_v27 }
  0x22   : > { %603 = vmatprep.subr.bf16.mxu0 %v602_v30 }
  0x25   : > { %605 = vmatpush1.bf16.msra.mxu0 %v604_v33 }
  0x28   : > { %584 = vmatmul.mubr.msk.f32.vlgmr.msra.gmra.mrb[0].mxu0 %vm281_vm1, %v264_v34 }
  0x90   : > { %v418_v59 = vpop.permute.xlu0 %417 }
  0xfb   : > { %v351_v40 = vpop.f32.mrb[0].mxu0 }
  0xfc   : > { %v353_v42 = vpop.f32.mrb[1].mxu0 }
  0xfd   : > { %v358_v43 = vcombine.low %v351_v40, %v353_v42 }
  0xff   : > { %v365_v45 = vrot.slane %v358_v43, %v364_v27 }
 0x101   : > { %v367_v47 = vadd.f32 %v365_v45, %v263_v44 }
 0x103   : > { %v387_v48 = vadd.f32 %v385_v46, %v367_v47 }
 0x105   : > { %398 = vrot.lane.b32.xlu1 %v387_v48, %s646_s25  ;;  %v585_v49 = vmul.f32 -1.442695, %v387_v48  ;;  %v395_v53 = vrot.slane %v387_v48, 2 }
 0x107   : > { %623 = vpow2.f32 %v585_v49 }
 0x108   : > { %625 = vtanh.f32 %v395_v53 }
 0x109   : > { %436 = vperm.xlu1 %621, %v433_v50  }
 0x111   : > { %v624_v54 = vpop.eup %623 }
 0x112   : > { %v391_v55 = vadd.f32 1.0, %v624_v54  ;;  %v626_v56 = vpop.eup %625 }
 0x114   : > { %627 = vrcp.f32 %v391_v55 }
 0x11e   : > { %v628_v57 = vpop.eup %627 }
 0x11f   : > { %v421_v58 = vmul.f32 %v628_v57, %v626_v56  ;;  %v420_v60 = vmul.f32 %v628_v57, %v418_v59 }
 0x121   : > { %423 = vrot.lane.b32.xlu0 %v421_v58, %s646_s25 }
 0x125   : > { %440 = vperm.xlu0 %622, %v433_v50  }
 0x177   : > { %v399_v1 = vpop.permute.xlu1 %398 }
 0x178   : > { %v400_v2 = vrot.slane %v399_v1, 2 }
 0x17a   : > { %v586_v3 = vmul.f32 -1.442695, %v400_v2 }
 0x188   : > { %v437_v6 = vpop.permute.xlu1 %436 }
 0x193   : > { %v424_v61 = vpop.permute.xlu0 %423 }
 0x194   : > { %v426_v62 = vadd.f32 %v424_v61, %v420_v60 }
 0x196   : > { %629 = vtanh.f32 %v426_v62  ;;  %v456_v0 = vrot.slane %v426_v62, %v364_v27 }
 0x197   : > { %631 = vpow2.f32 %v586_v3 }
 0x1a0   : > { %v630_v63 = vpop.eup %629 }
 0x1a1   : > { %429 = vrot.lane.b32.xlu1 %v630_v63, %s646_s25  ;;  %v632_v4 = vpop.eup %631 }
 0x1a2   : > { %v405_v5 = vadd.f32 1.0, %v632_v4 }
 0x1a4   : > { %633 = vrcp.f32 %v405_v5  ;;  %v441_v7 = vpop.permute.xlu0 %440 }
 0x1a5   : > { %457 = vrot.lane.b32.xlu1 %v456_v0, %s646_s25  ;;  %v444_v8 = vsel %vm443_vm2, %v437_v6, %v441_v7 }
 0x1a6   : > { %v446_v9 = vsub.f32 1.0, %v444_v8 }
 0x1a8   : > { %v447_v13 = vmul.f32 %v446_v9, %v264_v34  ;;  %v461_v17 = vmul.f32 %v446_v9, %v744_v24 }
 0x1ae   : > { %v634_v10 = vpop.eup %633 }
 0x213   : > { %v430_v11 = vpop.permute.xlu1 %429 }
 0x214   : > { %v432_v12 = vmul.f32 %v634_v10, %v430_v11 }
 0x216   : > { %v445_v14 = vmul.f32 %v444_v8, %v432_v12 }
 0x217   : > { %v458_v15 = vpop.permute.xlu1 %457 }
 0x218   : > { %v448_v16 = vadd.f32 %v447_v13, %v445_v14  ;;  %v460_v18 = vmul.f32 %v458_v15, %v444_v8 }
 0x21a   : > { %464 = vst.msk [vmem:[#allocation2] sm:$0x3] %vm463_vm3, %v448_v16  ;;  %v462_v19 = vadd.f32 %v461_v17, %v460_v18  ;;  %v466_v20 = vmul.f32 %v448_v16, %v444_v8 }
 0x21c   : > { %465 = vst.msk [vmem:[#allocation3] sm:$0x3] %vm463_vm3, %v462_v19  ;;  %470 = vrot.lane.b32.xlu0 %v466_v20, %s649_s26 }
 0x21d   : > { %468 = vst.msk [vmem:[%s701_s7] sm:$0x3] %vm467_vm4, %v466_v20 }
 0x28e   : > { %v471_v21 = vpop.permute.xlu0 %470 }
 0x28f   : > { %473 = vst.msk [vmem:[%s706_s11] sm:$0x3] %vm467_vm4, %v471_v21 }
 0x290 PF: > { %s16_s18 = sadd.s32 1, %s641_s18  }
 0x291   : > { %p13_p6 = scmp.ge.s32.totalorder %s16_s18, 10  }
 0x293   :  { %15 = sbr.rel (!%p13_p6) target bundleno = 1 (0x1), region = 85 }

// kernel: _lambda_.9
= control target key start
LH: loop header
LB: loop body
LE: loop exit
PB: predicated region body
PF: predicated region fallthrough
CT: control target
= control target key end

     0   :  { %s2276_s0 = inlined_call_operand.vmem [shape: f32[2,8,64], index: 0, kind: input, shape index: {}]   ;;  %s2277_s1 = inlined_call_operand.vmem [shape: f32[2,1,8], index: 1, kind: input, shape index: {}]   ;;  %s2278_s2 = inlined_call_operand.vmem [shape: f32[64,512], index: 2, kind: input, shape index: {}]   ;;  %s2279_s3 = inlined_call_operand.vmem [shape: f32[1,512], index: 3, kind: input, shape index: {}]   ;;  %s2280_s4 = inlined_call_operand.vmem [shape: f32[128,128], index: 4, kind: input, shape index: {}]   ;;  %s2281_s5 = inlined_call_operand.vmem [shape: f32[1,128], index: 5, kind: input, shape index: {}]   ;;  %s2282_s6 = inlined_call_operand.vmem [shape: f32[4,128,128], index: 6, kind: input, shape index: {}]   ;;  %s2283_s7 = inlined_call_operand.vmem [shape: f32[4,1,128], index: 7, kind: input, shape index: {}]   ;;  %s2284_s8 = inlined_call_operand.vmem [shape: f32[4,1,128], index: 8, kind: input, shape index: {}]   ;;  %s2285_s9 = inlined_call_operand.vmem [shape: f32[4,1,1], index: 9, kind: input, shape index: {}]   ;;  %s2286_s10 = inlined_call_operand.hbm [shape: f32[2,8,8], index: 10, kind: output, shape index: {0}]   ;;  %s2287_s11 = inlined_call_operand.vmem [shape: f32[2,4,8,8], index: 11, kind: output, shape index: {1}]  }
   0x1   :  { %2302 = sst [smem:[#allocation19_spill]] %s2276_s0 }
   0x2   :  { %2303 = sst [smem:[#allocation20_spill]] %s2277_s1 }
   0x3   :  { %2304 = sst [smem:[#allocation21_spill]] %s2281_s5 }
   0x4   :  { %2305 = sst [smem:[#allocation22_spill]] %s2286_s10 }
   0x5   :  { %17 = vsyncpa [#allocation5], 0 }
   0x6   :  { %19 = vsyncpa [#allocation5 + $0x1], 0  ;;  %s1850_s17 = smov 0   ;;  %s1852_s18 = smov 0  }
   0x7   :  { %s1854_s19 = smov 0   ;;  %s1856_s20 = smov 0  }
   0x8   :  { %s1858_s21 = smov 0   ;;  %s1860_s22 = smov 0  }
   0x9   :  { %s1862_s23 = smov 0   ;;  %s1864_s24 = smov 0  }
   0xa LB: > { %2306 = sst [smem:[#allocation7_spill]] %s1751_s17  ;;  %s1315_s25 = sadd.s32 4294967295, %s1779_s24   ;;  %s1779_s24 = sphi %s1864_s24, %s25_s24   ;;  %s1775_s23 = sphi %s1862_s23, %s2339_s23   ;;  %s1771_s22 = sphi %s1860_s22, %s2338_s22   ;;  %s1767_s21 = sphi %s1858_s21, %s2337_s21   ;;  %s1763_s20 = sphi %s1856_s20, %s2336_s20   ;;  %s1759_s19 = sphi %s1854_s19, %s2335_s19   ;;  %s1755_s18 = sphi %s1852_s18, %s2334_s18   ;;  %s1751_s17 = sphi %s1850_s17, %s2333_s17  }
   0xb   : > { %2307 = sst [smem:[#allocation8_spill]] %s1755_s18  ;;  %s1316_s26 = sadd.s32 4294967294, %s1779_s24  }
   0xc   : > { %2308 = sst [smem:[#allocation9_spill]] %s1759_s19  ;;  %s34_s27 = sadd.s32 1, %s1771_s22 }
   0xd   : > { %2309 = sst [smem:[#allocation10_spill]] %s1767_s21  ;;  %p35_p0 = scmp.ge.s32.totalorder %s34_s27, 4 }
   0xe   : > { %2310 = sst [smem:[#allocation11_spill]] %s1771_s22  ;;  %s37_s28 = sadd.s32 1, %s1775_s23 }
   0xf   : > { %2311 = sst [smem:[#allocation12_spill]] %s1775_s23  ;;  %p294_p1 = scmp.ne.s32.totalorder %s1759_s19, %s1755_s18 }
  0x10   : > { %2312 = sst [smem:[#allocation13_spill]] %s1779_s24  ;;  %p295_p2 = scmp.eq.s32.totalorder %s1315_s25, 7 }
  0x11   : > { %s2341_s27 = smov (%p35_p0, %s34_s27), 0  ;;  %s2343_s28 = smov (!%p35_p0, %s37_s28), %s1775_s23 }
  0x12   : > { %2313 = sst [smem:[#allocation14_spill]] %s2341_s27  ;;  %p1899_p3 = por %p295_p2, %p294_p1 }
  0x13   : > { %p300_p4 = scmp.ne.s32.totalorder %s1755_s18, %s1751_s17  ;;  %p39_p5 = scmp.ge.s32.totalorder %s2343_s28, 2 }
  0x14   : > { %s2314_s29 = scalar_select %p1899_p3, 1, 0 }
  0x15   : > { %p301_p6 = scmp.eq.s32.totalorder %s1316_s26, 7  ;;  %p1319_p7 = scmp.ge.s32.totalorder %s1779_s24, 1 }
  0x16   : > { %2315 = sst [smem:[#allocation15_spill]] %s2314_s29  ;;  %p398_p8 = scmp.lt.s32.totalorder %s1779_s24, 9 }
  0x17   : > { %s2345_s28 = smov (%p39_p5, %s2343_s28), 0  ;;  %p1909_p9 = por %p301_p6, %p300_p4 }
  0x18   : > { %2316 = sst [smem:[#allocation16_spill]] %s2345_s28  ;;  %p399_p10 = pnand %p1319_p7, %p398_p8 }
  0x19   : > { %s2317_s30 = scalar_select %p1909_p9, 1, 0 }
  0x1a   : > { %s281_s12 = ssub.s32 %s1775_s23, %s2345_s28  ;;  %s284_s13 = sadd.s32 1, %s1759_s19 }
  0x1b   : > { %2318 = sst [smem:[#allocation17_spill]] %s2317_s30  ;;  %p282_p11 = scmp.eq.s32.totalorder %s281_s12, 0 }
  0x1c   : > { %402 = sbr.rel (%p399_p10) target bundleno = 1166 (0x48e), region = 60  ;;  %s2289_s15 = sand.u32 (!%p399_p10), 1, %s1755_s18  }
  0x1d   : > { %s1917_s14 = scalar_select %p282_p11, %s1759_s19, %s284_s13  }
  0x1e   : > { %p462_p12 = scmp.lt.s32.totalorder (!%p399_p10), %s1767_s21, 1  ;;  %s1923_s16 = sshll.u32 (!%p399_p10), %s2289_s15, 3 }
  0x1f   : > { %2319 = sst [smem:[#allocation18_spill]] %s1917_s14  ;;  %p469_p13 = scmp.lt.s32.totalorder (!%p399_p10), %s1763_s20, 3 }
  0x20   : > { %s2321_s0 = sld [smem:[#allocation19_spill]] (!%p399_p10)  ;;  %s451_s30 = scalar_lea.vmem (!%p399_p10), [#allocation4], %s1923_s16 }
  0x21   : > { %p1326_p0 = scmp.ne.s32.totalorder (!%p399_p10), %s1763_s20, 0 }
  0x23   : > { %s1927_s25 = scalar_select %p462_p12, %s1767_s21, 1 }
  0x24   : > { %s1930_s26 = scalar_select %p469_p13, %s1763_s20, 3 }
  0x25   : > { %s1321_s12 = sshll.u32 %s1927_s25, 3  ;;  %s1324_s27 = sshll.u32 %s1927_s25, 2  ;;  %v497_v0 = vld [vmem:[%s2278_s2 + $0x8] sm:$0xff] (!%p1326_p0)  ;;  %v496_v2 = vld [vmem:[%s2278_s2] sm:$0xff] (!%p1326_p0)  ;;  %v1781_v7 = vmov (!%p1326_p0), 0.0   ;;  %v1782_v8 = vmov (!%p1326_p0), 0.0|0.0  }
  0x26   : > { %s1940_s22 = scalar_lea.vmem %s2321_s0, %s1321_s12  ;;  %s1337_s14 = sshll.u32 %s1930_s26, 7  ;;  %v501_v1 = vld [vmem:[%s2278_s2 + $0x28] sm:$0xff] (!%p1326_p0)  ;;  %v500_v4 = vld [vmem:[%s2278_s2 + $0x20] sm:$0xff] (!%p1326_p0)  ;;  %618 = vmatprep.mubr.f32.mxu1 (!%p1326_p0), %v1781_v7  ;;  %1533 = vmatprep.subr.bf16.mxu0 (!%p1326_p0), %v1782_v8  ;;  %v710_v23 = vld [vmem:[%s2280_s4 + $0x10] sm:$0xff] (!%p1326_p0)  ;;  %vm550_vm0 = vcmask (!%p1326_p0), 523264   ;;  %vm1783_vm1 = vmmov (!%p1326_p0), 0  }
  0x27   : > { %s1946_s17 = scalar_lea.vmem %s2282_s6, %s1337_s14  ;;  %s476_s29 = scalar_lea.vmem %s2283_s7, %s1930_s26  ;;  %v1501_v3 = vpack.c.bf16 (!%p1326_p0), %v501_v1, %v497_v0  ;;  %v505_v5 = vld [vmem:[%s2278_s2 + $0x48] sm:$0xff] (!%p1326_p0)  ;;  %v1503_v9 = vpack.c.bf16 (!%p1326_p0), %v500_v4, %v496_v2  ;;  %v504_v11 = vld [vmem:[%s2278_s2 + $0x40] sm:$0xff] (!%p1326_p0)  ;;  %v711_v24 = vld [vmem:[%s2280_s4 + $0x18] sm:$0xff] (!%p1326_p0)  ;;  %1423 = vmatprep.mubr.msk.f32.mxu0 (!%p1326_p0), %vm1783_vm1, %v1781_v7  ;;  %vm880_vm6 = vcmask (!%p1326_p0), 64512  }
  0x28   : > { %s479_s28 = scalar_lea.vmem %s2284_s8, %s1930_s26  ;;  %s482_s23 = scalar_lea.vmem %s2285_s9, %s1930_s26  ;;  %v509_v6 = vld [vmem:[%s2278_s2 + $0x68] sm:$0xff] (!%p1326_p0)  ;;  %v508_v12 = vld [vmem:[%s2278_s2 + $0x60] sm:$0xff] (!%p1326_p0)  ;;  %v1537_v30 = vpack.c.bf16 (!%p1326_p0), %v711_v24, %v710_v23  ;;  %v499_v31 = vld [vmem:[%s2278_s2 + $0x18] sm:$0xff] (!%p1326_p0) }
  0x29   : > { %s488_s12 = sadd.s32 %s1324_s27, %s1930_s26  ;;  %494 = sbr.rel (%p1326_p0) target bundleno = 703 (0x2bf), region = 64  ;;  %v1505_v10 = vpack.c.bf16 (!%p1326_p0), %v509_v6, %v505_v5  ;;  %v513_v13 = vld [vmem:[%s2278_s2 + $0x88] sm:$0xff] (!%p1326_p0)  ;;  %1502 = vmatprep.subr.bf16.mxu1 (!%p1326_p0), %v1501_v3  ;;  %v1507_v15 = vpack.c.bf16 (!%p1326_p0), %v508_v12, %v504_v11  ;;  %v512_v16 = vld [vmem:[%s2278_s2 + $0x80] sm:$0xff] (!%p1326_p0)  ;;  %v503_v32 = vld [vmem:[%s2278_s2 + $0x38] sm:$0xff] (!%p1326_p0) }
  0x2a   : > { %s1325_s0 = sshll.u32 %s488_s12, 3  ;;  %v517_v14 = vld [vmem:[%s2278_s2 + $0xa8] sm:$0xff] (!%p1326_p0)  ;;  %1504 = vmatpush1.bf16.msra.mxu1 (!%p1326_p0), %v1503_v9  ;;  %v516_v17 = vld [vmem:[%s2278_s2 + $0xa0] sm:$0xff] (!%p1326_p0)  ;;  %v1517_v36 = vpack.c.bf16 (!%p1326_p0), %v503_v32, %v499_v31  ;;  %v498_v38 = vld [vmem:[%s2278_s2 + $0x10] sm:$0xff] (!%p1326_p0)  ;;  %s2322_s1 = sld [smem:[#allocation21_spill]] (!%p1326_p0) }
  0x2b   : > { %s1965_s19 = scalar_lea.vmem %s2287_s11, %s1325_s0  ;;  %1506 = vmatprep.subr.bf16.mxu1 (!%p1326_p0), %v1505_v10  ;;  %v1509_v18 = vpack.c.bf16 (!%p1326_p0), %v517_v14, %v513_v13  ;;  %v521_v19 = vld [vmem:[%s2278_s2 + $0xc8] sm:$0xff] (!%p1326_p0)  ;;  %v708_v21 = vld [vmem:[%s2280_s4] sm:$0xff] (!%p1326_p0)  ;;  %v1511_v26 = vpack.c.bf16 (!%p1326_p0), %v516_v17, %v512_v16  ;;  %v502_v39 = vld [vmem:[%s2278_s2 + $0x30] sm:$0xff] (!%p1326_p0)  ;;  %v530_v13 = vlaneseq (!%p1326_p0)  ;;  %s2323_s20 = sld [smem:[#allocation20_spill]] (!%p1326_p0) }
  0x2c   : > { %v525_v20 = vld [vmem:[%s2278_s2 + $0xe8] sm:$0xff] (!%p1326_p0)  ;;  %v520_v28 = vld [vmem:[%s2278_s2 + $0xc0] sm:$0xff] (!%p1326_p0)  ;;  %v507_v40 = vld [vmem:[%s2278_s2 + $0x58] sm:$0xff] (!%p1326_p0)  ;;  %v1519_v45 = vpack.c.bf16 (!%p1326_p0), %v502_v39, %v498_v38 }
  0x2d   : > { %v709_v22 = vld [vmem:[%s2280_s4 + $0x8] sm:$0xff] (!%p1326_p0)  ;;  %v1513_v27 = vpack.c.bf16 (!%p1326_p0), %v525_v20, %v521_v19  ;;  %v524_v29 = vld [vmem:[%s2278_s2 + $0xe0] sm:$0xff] (!%p1326_p0)  ;;  %v511_v41 = vld [vmem:[%s2278_s2 + $0x78] sm:$0xff] (!%p1326_p0)  ;;  %v2129_v14 = vshrl.u32 (!%p1326_p0), %v530_v13, 7 }
  0x2e   : > { %v1534_v25 = vpack.c.bf16 (!%p1326_p0), %v709_v22, %v708_v21  ;;  %1508 = vmatpush1.bf16.msra.mxu1 (!%p1326_p0), %v1507_v15  ;;  %v712_v33 = vld [vmem:[%s2280_s4 + $0x20] sm:$0xff] (!%p1326_p0)  ;;  %v713_v34 = vld [vmem:[%s2280_s4 + $0x28] sm:$0xff] (!%p1326_p0)  ;;  %v1515_v35 = vpack.c.bf16 (!%p1326_p0), %v524_v29, %v520_v28  ;;  %v714_v42 = vld [vmem:[%s2280_s4 + $0x30] sm:$0xff] (!%p1326_p0)  ;;  %v1521_v46 = vpack.c.bf16 (!%p1326_p0), %v511_v41, %v507_v40 }
  0x2f   : > { %1510 = vmatprep.subr.bf16.mxu1 (!%p1326_p0), %v1509_v18  ;;  %v1540_v37 = vpack.c.bf16 (!%p1326_p0), %v713_v34, %v712_v33  ;;  %v715_v43 = vld [vmem:[%s2280_s4 + $0x38] sm:$0xff] (!%p1326_p0)  ;;  %v495_v44 = vld [vmem:[%s1940_s22] sm:$0xff] (!%p1326_p0)  ;;  %v506_v48 = vld [vmem:[%s2278_s2 + $0x50] sm:$0xff] (!%p1326_p0)  ;;  %v536_v16 = vsub.s32 (!%p1326_p0), 1, %v2129_v14  ;;  %v544_v28 = vsub.s32 (!%p1326_p0), 3, %v2129_v14 }
  0x30   : > { %1535 = vmatpush3.bf16.msra.mxu0 %v1534_v25  ;;  %v1543_v47 = vpack.c.bf16 %v715_v43, %v714_v42  ;;  %v510_v49 = vld [vmem:[%s2278_s2 + $0x70] sm:$0xff]  ;;  %v515_v50 = vld [vmem:[%s2278_s2 + $0x98] sm:$0xff]  ;;  %v716_v52 = vld [vmem:[%s2280_s4 + $0x40] sm:$0xff] }
  0x31   : > { %1536 = vmatprep.subr.bf16.mxu0 %v1782_v8  ;;  %v519_v51 = vld [vmem:[%s2278_s2 + $0xb8] sm:$0xff]  ;;  %v717_v53 = vld [vmem:[%s2280_s4 + $0x48] sm:$0xff]  ;;  %v1523_v54 = vpack.c.bf16 %v510_v49, %v506_v48  ;;  %v514_v57 = vld [vmem:[%s2278_s2 + $0x90] sm:$0xff]  ;;  %s2324_s13 = scalar_lea.vmem %s2323_s20, %s1927_s25 }
  0x32   : > { %1512 = vmatpush1.bf16.msra.mxu1 %v1511_v26  ;;  %v1525_v55 = vpack.c.bf16 %v519_v51, %v515_v50  ;;  %v1546_v56 = vpack.c.bf16 %v717_v53, %v716_v52  ;;  %v518_v58 = vld [vmem:[%s2278_s2 + $0xb0] sm:$0xff]  ;;  %v523_v59 = vld [vmem:[%s2278_s2 + $0xd8] sm:$0xff]  ;;  %v720_v5 = vld [vmem:[%s2280_s4 + $0x60] sm:$0xff]  ;;  %v540_v26 = vsub.s32 2, %v2129_v14 }
  0x33   : > { %1514 = vmatprep.subr.bf16.mxu1 %v1513_v27  ;;  %v527_v60 = vld [vmem:[%s2278_s2 + $0xf8] sm:$0xff]  ;;  %v718_v61 = vld [vmem:[%s2280_s4 + $0x50] sm:$0xff]  ;;  %v1527_v63 = vpack.c.bf16 %v518_v58, %v514_v57  ;;  %v721_v6 = vld [vmem:[%s2280_s4 + $0x68] sm:$0xff] }
  0x34   : > { %1538 = vmatpush3.bf16.msra.mxu0 %v1537_v30  ;;  %v719_v62 = vld [vmem:[%s2280_s4 + $0x58] sm:$0xff]  ;;  %v1529_v0 = vpack.c.bf16 %v527_v60, %v523_v59  ;;  %v522_v2 = vld [vmem:[%s2278_s2 + $0xd0] sm:$0xff]  ;;  %v1552_v9 = vpack.c.bf16 %v721_v6, %v720_v5  ;;  %v528_v15 = vld [vmem:[%s2279_s3] sm:$0xf]  ;;  %v1784_v59 = vmov 0  }
  0x35   : > { %1539 = vmatprep.subr.bf16.mxu0 %v1782_v8  ;;  %v1549_v1 = vpack.c.bf16 %v719_v62, %v718_v61  ;;  %v526_v3 = vld [vmem:[%s2278_s2 + $0xf0] sm:$0xff]  ;;  %v723_v11 = vld [vmem:[%s2280_s4 + $0x78] sm:$0xff]  ;;  %v537_v18 = vrot.slane %v528_v15, %v536_v16  ;;  %v541_v30 = vrot.slane %v528_v15, %v540_v26  ;;  %v545_v31 = vrot.slane %v528_v15, %v544_v28  ;;  %v1329_v38 = vld [vmem:[%s2322_s1] ss:$0 sm:$0xff] }
  0x36   : > { %1516 = vmatpush1.bf16.msra.mxu1 %v1515_v35  ;;  %v1531_v4 = vpack.c.bf16 %v526_v3, %v522_v2  ;;  %v722_v10 = vld [vmem:[%s2280_s4 + $0x70] sm:$0xff]  ;;  %v871_v58 = vld [vmem:[%s2324_s13] sm:$0x1] }
  0x37   : > { %1518 = vmatprep.subr.bf16.mxu1 %v1517_v36  ;;  %v1555_v12 = vpack.c.bf16 %v723_v11, %v722_v10  ;;  %vm872_vm7 = vcmp.gt.f32.partialorder %v871_v58, 0.0 }
  0x38   : > { %1541 = vmatpush3.bf16.msra.mxu0 %v1540_v37  ;;  %v873_v60 = vsel %vm872_vm7, 1, %v1784_v59 }
  0x39   : > { %1542 = vmatprep.subr.bf16.mxu0 %v1782_v8  ;;  %1327 = vmatmul.mubr.msk.f32.vlgmr.msra.gmra.mrb[0].mxu1 %vm550_vm0, %v495_v44 }
  0x3a   : > { %1520 = vmatpush1.bf16.msra.mxu1 %v1519_v45  ;;  %689 = vmatprep.mubr.f32.mxu1 %v1781_v7 }
  0x3b   : > { %1522 = vmatprep.subr.bf16.mxu1 %v1521_v46 }
  0x3c   : > { %1544 = vmatpush3.bf16.msra.mxu0 %v1543_v47 }
  0x3d   : > { %1545 = vmatprep.subr.bf16.mxu0 %v1782_v8 }
  0x3e   : > { %1524 = vmatpush1.bf16.msra.mxu1 %v1523_v54 }
  0x3f   : > { %1526 = vmatprep.subr.bf16.mxu1 %v1525_v55 }
  0x40   : > { %1547 = vmatpush3.bf16.msra.mxu0 %v1546_v56 }
  0x41   : > { %1548 = vmatprep.subr.bf16.mxu0 %v1782_v8 }
  0x42   : > { %1528 = vmatpush1.bf16.msra.mxu1 %v1527_v63 }
  0x43   : > { %1530 = vmatprep.subr.bf16.mxu1 %v1529_v0 }
  0x44   : > { %1550 = vmatpush3.bf16.msra.mxu0 %v1549_v1 }
  0x45   : > { %1551 = vmatprep.subr.bf16.mxu0 %v1782_v8 }
  0x46   : > { %1532 = vmatpush1.bf16.msra.mxu1 %v1531_v4 }
  0x47   : > { %1426 = vmatprep.subr.mxu1 %v1781_v7 }
  0x48   : > { %1553 = vmatpush3.bf16.msra.mxu0 %v1552_v9 }
  0x49   : > { %1328 = vmatmul.mubr.msk.f32.vlgmr.msra.gmra.mrb[2].mxu1 %vm550_vm0, %v495_v44  ;;  %1554 = vmatprep.subr.bf16.mxu0 %v1782_v8  ;;  %v532_v8 = vsub.s32 0, %v2129_v14 }
  0x4a   : > { %1428 = vmatprep.mubr.msk.f32.mxu1 %vm1783_vm1, %v1781_v7 }
  0x4b   : > { %v533_v17 = vrot.slane %v528_v15, %v532_v8  ;;  %v877_v61 = vrot.slane %v873_v60, %v532_v8 }
  0x4c   : > { %1556 = vmatpush3.bf16.msra.mxu0 %v1555_v12 }
  0x4d   : > { %vm878_vm8 = vcmp.eq.s32.totalorder %v877_v61, 1 }
 0x10c   : > { %v620_v19 = vpop.f32.mrb[0].mxu1 }
 0x10d   : > { %v621_v20 = vadd.f32 %v620_v19, %v533_v17  ;;  %v622_v21 = vpop.f32.mrb[1].mxu1 }
 0x10e   : > { %v623_v22 = vadd.f32 %v622_v21, %v537_v18 }
 0x10f   : > { %vm696_vm2 = vcmp.gt.f32.partialorder %v621_v20, 0.0  ;;  %v700_v7 = vmul.f32 0.1, %v621_v20 }
 0x110   : > { %v701_v23 = vmul.f32 0.1, %v623_v22  ;;  %vm697_vm3 = vcmp.gt.f32.partialorder %v623_v22, 0.0 }
 0x111   : > { %v704_v24 = vsel %vm696_vm2, %v621_v20, %v700_v7 }
 0x112   : > { %1427 = vmatpush3.xpose.msra.mxu1 %v704_v24  ;;  %v705_v25 = vsel %vm697_vm3, %v623_v22, %v701_v23 }
 0x113   : > { %1424 = vmatmul.mubr.f32.vlgmr.msra.gmra.mrb[0].mxu0 %v705_v25 }
 0x11c   : > { %v691_v27 = vpop.f32.mrb[2].mxu1 }
 0x11d   : > { %v693_v29 = vpop.f32.mrb[3].mxu1  ;;  %v692_v32 = vadd.f32 %v691_v27, %v541_v30 }
 0x11e   : > { %v694_v33 = vadd.f32 %v693_v29, %v545_v31 }
 0x11f   : > { %vm698_vm5 = vcmp.gt.f32.partialorder %v692_v32, 0.0  ;;  %v702_v35 = vmul.f32 0.1, %v692_v32 }
 0x120   : > { %vm699_vm4 = vcmp.gt.f32.partialorder %v694_v33, 0.0  ;;  %v703_v34 = vmul.f32 0.1, %v694_v33 }
 0x121   : > { %v706_v37 = vsel %vm698_vm5, %v692_v32, %v702_v35 }
 0x122   : > { %v707_v36 = vsel %vm699_vm4, %v694_v33, %v703_v34  ;;  %883 = vxpose.xlu0.b32.start.end [1/1] (short) %v706_v37, 128 }
 0x123   : > { %882 = vst [vmem:[#allocation2] sm:$0xff] %v707_v36 }
 0x1a2   : > { %v899_v42 = vpop.trf.xlu0 }
 0x1a3   : > { %915 = vst.msk [vmem:[#allocation3] sm:$0xff] %vm880_vm6, %v899_v42 }
 0x1a6   : > { %v900_v43 = vpop.trf.xlu0 }
 0x1a7   : > { %916 = vst.msk [vmem:[#allocation3 + $0x8] sm:$0xff] %vm880_vm6, %v900_v43 }
 0x1aa   : > { %v901_v44 = vpop.trf.xlu0 }
 0x1ab   : > { %917 = vst.msk [vmem:[#allocation3 + $0x10] sm:$0xff] %vm880_vm6, %v901_v44 }
 0x1ae   : > { %v902_v45 = vpop.trf.xlu0 }
 0x1af   : > { %918 = vst.msk [vmem:[#allocation3 + $0x18] sm:$0xff] %vm880_vm6, %v902_v45 }
 0x1b2   : > { %v903_v46 = vpop.trf.xlu0 }
 0x1b3   : > { %919 = vst.msk [vmem:[#allocation3 + $0x20] sm:$0xff] %vm880_vm6, %v903_v46 }
 0x1b6   : > { %v904_v47 = vpop.trf.xlu0 }
 0x1b7   : > { %920 = vst.msk [vmem:[#allocation3 + $0x28] sm:$0xff] %vm880_vm6, %v904_v47 }
 0x1ba   : > { %v905_v48 = vpop.trf.xlu0 }
 0x1bb   : > { %921 = vst.msk [vmem:[#allocation3 + $0x30] sm:$0xff] %vm880_vm6, %v905_v48 }
 0x1be   : > { %v906_v49 = vpop.trf.xlu0 }
 0x1bf   : > { %922 = vst.msk [vmem:[#allocation3 + $0x38] sm:$0xff] %vm880_vm6, %v906_v49 }
 0x1c2   : > { %v907_v50 = vpop.trf.xlu0 }
 0x1c3   : > { %923 = vst.msk [vmem:[#allocation3 + $0x40] sm:$0xff] %vm880_vm6, %v907_v50 }
 0x1c6   : > { %v908_v51 = vpop.trf.xlu0 }
 0x1c7   : > { %924 = vst.msk [vmem:[#allocation3 + $0x48] sm:$0xff] %vm880_vm6, %v908_v51 }
 0x1ca   : > { %v909_v52 = vpop.trf.xlu0 }
 0x1cb   : > { %925 = vst.msk [vmem:[#allocation3 + $0x50] sm:$0xff] %vm880_vm6, %v909_v52 }
 0x1ce   : > { %v910_v53 = vpop.trf.xlu0 }
 0x1cf   : > { %926 = vst.msk [vmem:[#allocation3 + $0x58] sm:$0xff] %vm880_vm6, %v910_v53 }
 0x1d2   : > { %v911_v54 = vpop.trf.xlu0 }
 0x1d3   : > { %927 = vst.msk [vmem:[#allocation3 + $0x60] sm:$0xff] %vm880_vm6, %v911_v54 }
 0x1d6   : > { %v912_v55 = vpop.trf.xlu0 }
 0x1d7   : > { %928 = vst.msk [vmem:[#allocation3 + $0x68] sm:$0xff] %vm880_vm6, %v912_v55 }
 0x1da   : > { %v913_v56 = vpop.trf.xlu0 }
 0x1db   : > { %929 = vst.msk [vmem:[#allocation3 + $0x70] sm:$0xff] %vm880_vm6, %v913_v56 }
 0x1de   : > { %v914_v57 = vpop.trf.xlu0 }
 0x1df   : > { %930 = vst.msk [vmem:[#allocation3 + $0x78] sm:$0xff] %vm880_vm6, %v914_v57 }
 0x1e6   : > { %v797_v39 = vpop.f32.mrb[0].mxu0 }
 0x1e7   : > { %v798_v40 = vadd.f32 %v1329_v38, %v797_v39  ;;  %v1425_v41 = vpop.f32.mrb[1].mxu0 }
 0x1e9   : > { %1429 = vmatmul.mubr.f32.vlgmr.msra.gmra.mrb[4].mxu1 %v798_v40 }
 0x2bc   : > { %v867_v62 = vpop.f32.mrb[4].mxu1 }
 0x2bd   : > { %v879_v63 = vsel %vm878_vm8, %v867_v62, -inf  ;;  %v1430_v0 = vpop.f32.mrb[5].mxu1 }
 0x2be   : > { %881 = vst.msk [vmem:[%s451_s30] sm:$0xff] %vm880_vm6, %v879_v63 }
 0x2bf PF: > { %v932_v1 = vld [vmem:[%s1946_s17] sm:$0xff]  ;;  %v933_v2 = vld [vmem:[%s1946_s17 + $0x8] sm:$0xff]  ;;  %v934_v3 = vld [vmem:[%s1946_s17 + $0x10] sm:$0xff]  ;;  %v1785_v4 = vmov 0.0|0.0   ;;  %vm1786_vm9 = vmmov 0   ;;  %v1787_v9 = vmov 0.0  }
 0x2c0   : > { %1557 = vmatprep.subr.bf16.mxu0 %v1785_v4  ;;  %v1558_v5 = vpack.c.bf16 %v933_v2, %v932_v1  ;;  %v935_v6 = vld [vmem:[%s1946_s17 + $0x18] sm:$0xff]  ;;  %1463 = vmatprep.mubr.msk.f32.mxu0 %vm1786_vm9, %v1787_v9  ;;  %v936_v11 = vld [vmem:[%s1946_s17 + $0x20] sm:$0xff]  ;;  %v937_v12 = vld [vmem:[%s1946_s17 + $0x28] sm:$0xff]  ;;  %v1788_v54 = vmov 0   ;;  %s1158_s14 = sshll.u32 %s451_s30, 4  ;;  %s2328_s0 = sld [smem:[#allocation22_spill]]  ;;  %s1159_s14 = int_to_ptr.vmem [resolvable:$true] %s1158_s14 }
 0x2c1   : > { %1581 = vmatprep.subr.bf16.mxu1 %v1785_v4  ;;  %1498 = vmatprep.mubr.msk.f32.mxu1 %vm1786_vm9, %v1787_v9  ;;  %v1561_v10 = vpack.c.bf16 %v935_v6, %v934_v3  ;;  %v2178_v13 = vld [vmem:[#allocation2] sm:$0xff]  ;;  %v1025_v15 = vld [vmem:[#allocation3] sm:$0xff]  ;;  %v1026_v16 = vld [vmem:[#allocation3 + $0x8] sm:$0xff]  ;;  %v1564_v18 = vpack.c.bf16 %v937_v12, %v936_v11  ;;  %s1685_s13 = scalar_lea.vmem %s1159_s14, 128 }
 0x2c2   : > { %1559 = vmatpush3.bf16.msra.mxu0 %v1558_v5  ;;  %v1331_v14 = vld [vmem:[%s479_s28] ss:$0 sm:$0xff]  ;;  %v1027_v17 = vld [vmem:[#allocation3 + $0x10] sm:$0xff]  ;;  %v1582_v19 = vpack.c.bf16 %v1026_v16, %v1025_v15  ;;  %v938_v21 = vld [vmem:[%s1946_s17 + $0x30] sm:$0xff]  ;;  %s2326_s28 = sld [smem:[#allocation8_spill]]  ;;  %1684 = vset.pattern.permute.xlu0 %v1788_v54  ;;  %p1686_p1 = scmp.ne.s32.totalorder %s1159_s14, %s1685_s13 }
 0x2c3   : > { %1560 = vmatprep.subr.bf16.mxu0 %v1785_v4  ;;  %v1048_v8 = vmul.f32 %v1331_v14, %v2178_v13  ;;  %v1028_v20 = vld [vmem:[#allocation3 + $0x18] sm:$0xff]  ;;  %v939_v22 = vld [vmem:[%s1946_s17 + $0x38] sm:$0xff]  ;;  %v1029_v23 = vld [vmem:[#allocation3 + $0x20] sm:$0xff] }
 0x2c4   : > { %1583 = vmatpush3.bf16.msra.mxu1 %v1582_v19  ;;  %v1585_v7 = vpack.c.bf16 %v1028_v20, %v1027_v17  ;;  %v1030_v24 = vld [vmem:[#allocation3 + $0x28] sm:$0xff]  ;;  %v1567_v25 = vpack.c.bf16 %v939_v22, %v938_v21  ;;  %v940_v26 = vld [vmem:[%s1946_s17 + $0x40] sm:$0xff]  ;;  %v941_v27 = vld [vmem:[%s1946_s17 + $0x48] sm:$0xff]  ;;  %p1687_p2 = pnand %p1686_p1, %p1899_p3 }
 0x2c5   : > { %1049 = vadd.xlane.f32.xlu0 %v1048_v8  ;;  %1584 = vmatprep.subr.bf16.mxu1 %v1785_v4  ;;  %v1588_v28 = vpack.c.bf16 %v1030_v24, %v1029_v23  ;;  %v1031_v29 = vld [vmem:[#allocation3 + $0x30] sm:$0xff]  ;;  %v1032_v30 = vld [vmem:[#allocation3 + $0x38] sm:$0xff]  ;;  %v1570_v31 = vpack.c.bf16 %v941_v27, %v940_v26  ;;  %v942_v32 = vld [vmem:[%s1946_s17 + $0x50] sm:$0xff] }
 0x2c6   : > { %1562 = vmatpush3.bf16.msra.mxu0 %v1561_v10  ;;  %v943_v33 = vld [vmem:[%s1946_s17 + $0x58] sm:$0xff]  ;;  %v1591_v34 = vpack.c.bf16 %v1032_v30, %v1031_v29  ;;  %v1033_v35 = vld [vmem:[#allocation3 + $0x40] sm:$0xff]  ;;  %v1034_v36 = vld [vmem:[#allocation3 + $0x48] sm:$0xff]  ;;  %p1688_p4 = pneg %p1687_p2 }
 0x2c7   : > { %1563 = vmatprep.subr.bf16.mxu0 %v1785_v4  ;;  %v1573_v37 = vpack.c.bf16 %v943_v33, %v942_v32  ;;  %v944_v38 = vld [vmem:[%s1946_s17 + $0x60] sm:$0xff]  ;;  %v945_v39 = vld [vmem:[%s1946_s17 + $0x68] sm:$0xff]  ;;  %v1594_v40 = vpack.c.bf16 %v1034_v36, %v1033_v35  ;;  %v1035_v41 = vld [vmem:[#allocation3 + $0x50] sm:$0xff] }
 0x2c8   : > { %1586 = vmatpush3.bf16.msra.mxu1 %v1585_v7  ;;  %v1036_v42 = vld [vmem:[#allocation3 + $0x58] sm:$0xff]  ;;  %v1576_v43 = vpack.c.bf16 %v945_v39, %v944_v38  ;;  %v946_v44 = vld [vmem:[%s1946_s17 + $0x70] sm:$0xff]  ;;  %v947_v45 = vld [vmem:[%s1946_s17 + $0x78] sm:$0xff]  ;;  %s2325_s17 = sld [smem:[#allocation10_spill]]  ;;  %s2329_s5 = sand.u32 1, %s2326_s28  }
 0x2c9   : > { %1587 = vmatprep.subr.bf16.mxu1 %v1785_v4  ;;  %v1597_v46 = vpack.c.bf16 %v1036_v42, %v1035_v41  ;;  %v1037_v47 = vld [vmem:[#allocation3 + $0x60] sm:$0xff]  ;;  %v1038_v48 = vld [vmem:[#allocation3 + $0x68] sm:$0xff]  ;;  %v1579_v49 = vpack.c.bf16 %v947_v45, %v946_v44  ;;  %v1039_v51 = vld [vmem:[#allocation3 + $0x70] sm:$0xff]  ;;  %s1137_s20 = scalar_lea.sflag [#allocation5], %s2329_s5 }
 0x2ca   : > { %1565 = vmatpush3.bf16.msra.mxu0 %v1564_v18  ;;  %v1600_v50 = vpack.c.bf16 %v1038_v48, %v1037_v47  ;;  %v1040_v52 = vld [vmem:[#allocation3 + $0x78] sm:$0xff] }
 0x2cb   : > { %1566 = vmatprep.subr.bf16.mxu0 %v1785_v4  ;;  %v1603_v53 = vpack.c.bf16 %v1040_v52, %v1039_v51  ;;  %v1332_v55 = vld [vmem:[%s482_s23] ss:$0 sm:$0xff] }
 0x2cc   : > { %1589 = vmatpush3.bf16.msra.mxu1 %v1588_v28  ;;  %v1330_v58 = vld [vmem:[%s476_s29] ss:$0 sm:$0xff]  ;;  %s1789_s29 = smov [#allocation4]  }
 0x2cd   : > { %1590 = vmatprep.subr.bf16.mxu1 %v1785_v4  ;;  %s1689_s26 = sshll.u32 %s1789_s29, 4  ;;  %s1690_s26 = int_to_ptr.vmem [resolvable:$false] %s1689_s26 }
 0x2ce   : > { %1568 = vmatpush3.bf16.msra.mxu0 %v1567_v25  ;;  %s1334_s21 = sshll.u32 %s2325_s17, 7  ;;  %s1691_s25 = scalar_lea.vmem %s1690_s26, 256 }
 0x2cf   : > { %1569 = vmatprep.subr.bf16.mxu0 %v1785_v4  ;;  %s2226_s23 = scalar_lea.hbm %s2328_s0, %s1334_s21  ;;  %p1692_p5 = scmp.lt.s32.totalorder %s1159_s14, %s1690_s26 }
 0x2d0   : > { %1592 = vmatpush3.bf16.msra.mxu1 %v1591_v34  ;;  %p1693_p6 = scmp.lt.s32.totalorder %s1691_s25, %s1685_s13 }
 0x2d1   : > { %1593 = vmatprep.subr.bf16.mxu1 %v1785_v4 }
 0x2d2   : > { %1571 = vmatpush3.bf16.msra.mxu0 %v1570_v31  ;;  %p1694_p7 = por %p1693_p6, %p1692_p5 }
 0x2d3   : > { %1572 = vmatprep.subr.bf16.mxu0 %v1785_v4 }
 0x2d4   : > { %1595 = vmatpush3.bf16.msra.mxu1 %v1594_v40  ;;  %p1695_p8 = pnand %p1694_p7, %p1688_p4 }
 0x2d5   : > { %1596 = vmatprep.subr.bf16.mxu1 %v1785_v4 }
 0x2d6   : > { %1574 = vmatpush3.bf16.msra.mxu0 %v1573_v37 }
 0x2d7   : > { %1575 = vmatprep.subr.bf16.mxu0 %v1785_v4 }
 0x2d8   : > { %1598 = vmatpush3.bf16.msra.mxu1 %v1597_v46 }
 0x2d9   : > { %1599 = vmatprep.subr.bf16.mxu1 %v1785_v4 }
 0x2da   : > { %1577 = vmatpush3.bf16.msra.mxu0 %v1576_v43 }
 0x2db   : > { %1578 = vmatprep.subr.bf16.mxu0 %v1785_v4 }
 0x2dc   : > { %1601 = vmatpush3.bf16.msra.mxu1 %v1600_v50 }
 0x2dd   : > { %1602 = vmatprep.subr.bf16.mxu1 %v1785_v4 }
 0x2de   : > { %1580 = vmatpush3.bf16.msra.mxu0 %v1579_v49 }
 0x2e0   : > { %1604 = vmatpush3.bf16.msra.mxu1 %v1603_v53 }
 0x2e1   : > { %1464 = vmatmul.mubr.f32.vlgmr.msra.gmra.mrb[0].mxu0 %v2178_v13 }
 0x352   : > { %v1050_v56 = vpop.xlane.xlu0 %1049 }
 0x353   : > { %v1058_v57 = vadd.f32 %v1332_v55, %v1050_v56 }
 0x355   : > { %1061 = vperm.xlu0 %1684, %v1058_v57  }
 0x3b4   : > { %v1021_v59 = vpop.f32.mrb[0].mxu0 }
 0x3b5   : > { %v1022_v60 = vadd.f32 %v1330_v58, %v1021_v59  ;;  %v1465_v61 = vpop.f32.mrb[1].mxu0 }
 0x3b7   : > { %1499 = vmatmul.mubr.f32.vlgmr.msra.gmra.mrb[0].mxu1 %v1022_v60 }
 0x3b8   : > { %1698 = shalt.err (!%p1695_p8)
}
 0x3b9   : > { %s1699_s16 = scalar_lea.hbm %s2226_s23, 128  ;;  %s1703_s17 = scalar_lea.hbm %s2328_s0, 256 }
 0x3ba   : > { %p1700_p10 = scmp.ne.s32.totalorder %s2226_s23, %s1699_s16  ;;  %p1704_p13 = scmp.lt.u32.totalorder %s2226_s23, %s2328_s0 }
 0x3bb   : > { %p1705_p0 = scmp.lt.u32.totalorder %s1703_s17, %s1699_s16  ;;  %p1707_p2 = scmp.lt.u32.totalorder %s1699_s16, %s2226_s23 }
 0x3bc   : > { %p1701_p11 = pnand %p1700_p10, %p1899_p3 }
 0x3bd   : > { %p1706_p1 = por %p1705_p0, %p1704_p13 }
 0x3be   : > { %p1702_p12 = pneg %p1701_p11 }
 0x3bf   : > { %p1708_p4 = por %p1707_p2, %p1706_p1 }
 0x3c1   : > { %p1709_p5 = pnand %p1708_p4, %p1702_p12 }
 0x3c3   : > { %1712 = shalt.err (!%p1709_p5)
}
 0x3c4   : > { %1605 = dma.vmem_to_hbm [thread:$0]  (%p1899_p3), %s1159_s14, 128, %s2226_s23, %s1137_s20   ;;  %vm1134_vm10 = vcmask 64512  }
 0x3d4   : > { %v1062_v62 = vpop.permute.xlu0 %1061 }
 0x48a   : > { %v1130_v63 = vpop.f32.mrb[0].mxu1 }
 0x48b   : > { %v1131_v0 = vadd.f32 %v1130_v63, %v1062_v62  ;;  %v1500_v1 = vpop.f32.mrb[1].mxu1 }
 0x48d   : > { %1135 = vst.msk [vmem:[%s1965_s19] sm:$0xff] %vm1134_vm10, %v1131_v0 }
 0x48e PF: > { %s2330_s10 = sld [smem:[#allocation13_spill]]  ;;  %s2331_s24 = sld [smem:[#allocation7_spill]] }
 0x494   : > { %p1611_p6 = scmp.ge.s32.totalorder %s2330_s10, 2  ;;  %s1173_s21 = sand.u32 1, %s2331_s24  }
 0x495   : > { %s1174_s15 = scalar_lea.sflag [#allocation5], %s1173_s21 }
 0x496   : > { %p1608_p7 = pnand %p1611_p6, %p1909_p9 }
 0x498   : > { %1746 = dma.done.wait (!%p1608_p7), %s1174_s15, 128  }
 0x499   : > { %1748 = vsyncadd (!%p1608_p7), %s1174_s15, 4294967168  ;;  %s25_s24 = sadd.s32 1, %s2330_s10   ;;  %s2333_s17 = sld [smem:[#allocation8_spill]] }
 0x49a   : > { %p22_p3 = scmp.ge.s32.totalorder %s25_s24, 10   ;;  %s2334_s18 = sld [smem:[#allocation9_spill]] }
 0x49b   : > { %s2335_s19 = sld [smem:[#allocation18_spill]]  ;;  %s2336_s20 = sld [smem:[#allocation11_spill]] }
 0x49c   : > { %s2337_s21 = sld [smem:[#allocation12_spill]]  ;;  %s2338_s22 = sld [smem:[#allocation14_spill]] }
 0x49d   : > { %s2339_s23 = sld [smem:[#allocation16_spill]]  ;;  %24 = sbr.rel (!%p22_p3) target bundleno = 10 (0xa), region = 126 }
 0x4a4   :  { %1190 = vsyncpa [#allocation5], 1 }
 0x4a5   :  { %1192 = vsyncpa [#allocation5 + $0x1], 1 }

</bundles_post_ra>
